<compile_context>
chip_gen: v7x
topology: tpu7x:2x2x1
jax: 0.10.0
libtpu: 0.0.40
codegen_flags: <defaults>
</compile_context>

<pallas_src>
import functools
import math

import jax
import jax.numpy as jnp
from jax.experimental import pallas as pl
from jax.experimental.pallas import tpu as pltpu


# ----------------------------- feature / hardware probes ------------------------------
@functools.lru_cache(maxsize=None)
def _buffered_supported() -> bool:
    """Narrow feature probe for BlockSpec(pipeline_mode=pl.Buffered(1)); never retraces the kernel."""
    if not hasattr(pl, "Buffered"):
        return False
    try:
        pl.BlockSpec((8, 128), lambda i: (0, 0), pipeline_mode=pl.Buffered(1))
    except TypeError:
        return False
    return True


@functools.lru_cache(maxsize=None)
def _tpu_vmem_capacity_bytes() -> int:
    """Physical VMEM per core; conservative v7x value (64 MiB) if the query is unavailable."""
    if hasattr(pltpu, "get_tpu_info"):
        try:
            cap = getattr(pltpu.get_tpu_info(), "vmem_capacity_bytes", None)
            if cap:
                return int(cap)
        except Exception:  # capability query only — the kernel build below is never retried
            pass
    return 64 * 1024 * 1024


def _round_up(x: int, m: int) -> int:
    return (x + m - 1) // m * m


def _pick_f_tile(F: int, target: int = 512) -> int:
    """Largest multiple of 128 <= target that divides F; else the full F (single chunk)."""
    if F <= target:
        return F
    start = min(target, (F // 128) * 128)
    for tf in range(start, 127, -128):
        if F % tf == 0:
            return tf
    return F


# --------------------------------------------------------------------------------------
# Kernel: one (batch b, query-tile qi, F-tile fi) step of the encoder layer
# --------------------------------------------------------------------------------------
def _encoder_layer_kernel(
    x_q_ref,    # (TQ, D)       f32  query rows (also the residual)
    k_ref,      # (H, hd, S)    bf16 hoisted K projection, per-head lane-dense layout
    v_ref,      # (H, hd, S)    bf16 hoisted V projection
    wq_ref,     # (D, D)        bf16 pre-transposed, 1/sqrt(hd) folded in
    bq_ref,     # (1, D)        f32  1/sqrt(hd) folded in
    wo_ref,     # (D, D)        bf16 pre-transposed out_proj
    bo_ref,     # (1, D)        f32
    w1_ref,     # (D, TF)       bf16 pre-transposed lin1, F-tile block
    b1_ref,     # (1, TF)       f32  F-tile block
    w2_ref,     # (TF, D)       bf16 pre-transposed lin2, F-tile block
    b2_ref,     # (1, D)        f32
    g1_ref,     # (1, D)        f32  norm1.weight
    be1_ref,    # (1, D)        f32  norm1.bias
    g2_ref,     # (1, D)        f32  norm2.weight
    be2_ref,    # (1, D)        f32  norm2.bias
    o_ref,      # (TQ, D)
    x1_scr,     # (TQ, D)       f32  scratch: post-norm1 activations (lives across fi)
    ffn_scr,    # (TQ, D)       f32  scratch: lin2 accumulator (lives across fi)
    attn_scr,   # (TQ, D)       bf16 scratch: concatenated head outputs
    q_scr,      # (H, TQ, hd)   bf16 scratch: per-head queries
    oh_scr,     # (H, TQ, hd)   bf16 scratch: per-head attention outputs
    *,
    nhead: int,
    seq_len: int,
):
    fi = pl.program_id(2)
    tq, d = x_q_ref.shape
    hd = d // nhead
    s_pad = k_ref.shape[-1]

    def layer_norm(y, gamma, beta):  # f32 statistics, eps matches nn.LayerNorm default
        mu = jnp.mean(y, axis=-1, keepdims=True)
        c = y - mu
        var = jnp.mean(c * c, axis=-1, keepdims=True)
        return c * jax.lax.rsqrt(var + 1e-5) * gamma + beta

    # ---- attention + residual + norm1: once per (b, qi), on the first F step ----------
    @pl.when(fi == 0)
    def _attention_and_norm1():
        xq = x_q_ref[...].astype(jnp.float32)          # residual path stays f32

        # fused full-width Q projection (scale & bias already folded into wq/bq)
        q = jnp.dot(xq.astype(jnp.bfloat16), wq_ref[...],
                    preferred_element_type=jnp.float32) + bq_ref[...]
        q_b = q.astype(jnp.bfloat16)

        # static scatter into per-head layout: lane slices are compile-time constants
        for h in range(nhead):
            q_scr[h] = q_b[:, h * hd:(h + 1) * hd]

        # key-padding mask only when the sequence was padded (static condition)
        if seq_len < s_pad:
            key_mask = jax.lax.broadcasted_iota(jnp.int32, (1, s_pad), 1) < seq_len
        else:
            key_mask = None

        # per-head attention; fori_loop bounds live temps to one (TQ, S) score at a time,
        # all per-head access is leading-axis dynamic ref indexing (no lane slicing).
        def head_body(h, carry):
            qh = q_scr[h]                              # (TQ, hd) bf16
            kh = k_ref[h]                              # (hd, S)  bf16, lane-dense
            vh = v_ref[h]                              # (hd, S)  bf16, lane-dense
            s = jnp.dot(qh, kh, preferred_element_type=jnp.float32)     # (TQ, S)
            if key_mask is not None:
                s = jnp.where(key_mask, s, -1e30)
            s = s - jnp.max(s, axis=-1, keepdims=True)
            p = jnp.exp(s)
            p = p * pl.reciprocal(jnp.sum(p, axis=-1, keepdims=True), approx=True)
            oh = jax.lax.dot_general(p.astype(jnp.bfloat16), vh,
                                     (((1,), (1,)), ((), ())),
                                     preferred_element_type=jnp.float32)  # (TQ, hd)
            oh_scr[h] = oh.astype(jnp.bfloat16)
            return carry

        jax.lax.fori_loop(0, nhead, head_body, 0)

        # static gather back to lane-contiguous (TQ, D) so the out-proj GEMM is full width
        for h in range(nhead):
            attn_scr[:, h * hd:(h + 1) * hd] = oh_scr[h]

        attn = jnp.dot(attn_scr[...], wo_ref[...],
                       preferred_element_type=jnp.float32) + bo_ref[...]

        x1_scr[...] = layer_norm(xq + attn, g1_ref[...], be1_ref[...])
        ffn_scr[...] = jnp.zeros_like(ffn_scr)

    # ---- feed-forward partial for this F tile (every fi) --------------------------------
    x1_b = x1_scr[...].astype(jnp.bfloat16)
    h1 = jnp.maximum(
        jnp.dot(x1_b, w1_ref[...], preferred_element_type=jnp.float32) + b1_ref[...],
        0.0)                                                             # (TQ, TF)
    ffn_scr[...] += jnp.dot(h1.astype(jnp.bfloat16), w2_ref[...],
                            preferred_element_type=jnp.float32)          # (TQ, D)

    # ---- residual + norm2 on the last F step, written straight to the output ref --------
    @pl.when(fi == pl.num_programs(2) - 1)
    def _finalize():
        h2 = ffn_scr[...] + b2_ref[...]
        o_ref[...] = layer_norm(x1_scr[...] + h2,
                                g2_ref[...], be2_ref[...]).astype(o_ref.dtype)


# --------------------------------------------------------------------------------------
# Wrapper helpers
# --------------------------------------------------------------------------------------
def _prep_weights(params, nhead):
    """One-time HBM prep: transpose weights, fold softmax scale into Q, cast GEMM weights to bf16."""
    D = params["wout"].shape[0]
    hd = D // nhead
    scale = 1.0 / math.sqrt(hd)
    win, bin_ = params["win"], params["bin"]

    wq = (win[:D] * scale).T.astype(jnp.bfloat16)               # (D, D)
    bq = (bin_[:D] * scale).reshape(1, D).astype(jnp.float32)
    wo = params["wout"].T.astype(jnp.bfloat16)                  # (D, D)
    bo = params["bout"].reshape(1, D).astype(jnp.float32)
    w1 = params["w1"].T.astype(jnp.bfloat16)                    # (D, F)
    b1 = params["b1"].reshape(1, -1).astype(jnp.float32)
    w2 = params["w2"].T.astype(jnp.bfloat16)                    # (F, D)
    b2 = params["b2"].reshape(1, D).astype(jnp.float32)
    g1 = params["g1"].reshape(1, D).astype(jnp.float32)
    be1 = params["be1"].reshape(1, D).astype(jnp.float32)
    g2 = params["g2"].reshape(1, D).astype(jnp.float32)
    be2 = params["be2"].reshape(1, D).astype(jnp.float32)
    return wq, bq, wo, bo, w1, b1, w2, b2, g1, be1, g2, be2


def _hoisted_kv(xb_pad, params, nhead):
    """K/V projections computed ONCE per sequence in HBM, per-head lane-dense (B,H,hd,S) bf16."""
    B, S_pad, D = xb_pad.shape
    hd = D // nhead
    win, bin_ = params["win"], params["bin"]
    wk = win[D:2 * D].T.astype(jnp.bfloat16)
    bk = bin_[D:2 * D].astype(jnp.float32)
    wv = win[2 * D:].T.astype(jnp.bfloat16)
    bv = bin_[2 * D:].astype(jnp.float32)

    xb_b = xb_pad.astype(jnp.bfloat16)
    k = jnp.dot(xb_b, wk, preferred_element_type=jnp.float32) + bk     # (B, S, D) f32
    v = jnp.dot(xb_b, wv, preferred_element_type=jnp.float32) + bv
    k = k.astype(jnp.bfloat16).reshape(B, S_pad, nhead, hd).transpose(0, 2, 3, 1)
    v = v.astype(jnp.bfloat16).reshape(B, S_pad, nhead, hd).transpose(0, 2, 3, 1)
    return k, v                                                        # (B, H, hd, S) bf16


def _build_call(B, S_pad, D, hd, tq, tf, n_q, n_f, nhead, seq_len, out_dtype, vmem_limit):
    H = nhead

    def const_spec(shape):
        idx = lambda b, qi, fi: (0,) * len(shape)
        if _buffered_supported():
            # constant index map -> one resident buffer is enough (saves VMEM on v7x)
            return pl.BlockSpec(shape, idx, pipeline_mode=pl.Buffered(1))
        return pl.BlockSpec(shape, idx)

    in_specs = [
        # query tile rows (also residual)
        pl.BlockSpec((None, tq, D), lambda b, qi, fi: (b, qi, 0)),
        # hoisted K/V: block index constant over (qi, fi) -> fetched once per batch
        pl.BlockSpec((None, H, hd, S_pad), lambda b, qi, fi: (b, 0, 0, 0)),
        pl.BlockSpec((None, H, hd, S_pad), lambda b, qi, fi: (b, 0, 0, 0)),
        const_spec((D, D)), const_spec((1, D)),                         # wq, bq
        const_spec((D, D)), const_spec((1, D)),                         # wo, bo
        pl.BlockSpec((D, tf), lambda b, qi, fi: (0, fi)),               # w1 (F-tiled)
        pl.BlockSpec((1, tf), lambda b, qi, fi: (0, fi)),               # b1 (F-tiled)
        pl.BlockSpec((tf, D), lambda b, qi, fi: (fi, 0)),               # w2 (F-tiled)
        const_spec((1, D)),                                             # b2
        const_spec((1, D)), const_spec((1, D)),                         # g1, be1
        const_spec((1, D)), const_spec((1, D)),                         # g2, be2
    ]

    grid_spec = pltpu.PrefetchScalarGridSpec(
        num_scalar_prefetch=0,
        grid=(B, n_q, n_f),
        in_specs=in_specs,
        out_specs=pl.BlockSpec((None, tq, D), lambda b, qi, fi: (b, qi, 0)),
        scratch_shapes=[
            pltpu.VMEM((tq, D), jnp.float32),        # x1 (post-norm1)
            pltpu.VMEM((tq, D), jnp.float32),        # FFN accumulator
            pltpu.VMEM((tq, D), jnp.bfloat16),       # concatenated head outputs
            pltpu.VMEM((H, tq, hd), jnp.bfloat16),   # per-head Q
            pltpu.VMEM((H, tq, hd), jnp.bfloat16),   # per-head attention outputs
        ],
    )

    return pl.pallas_call(
        functools.partial(_encoder_layer_kernel, nhead=nhead, seq_len=seq_len),
        out_shape=jax.ShapeDtypeStruct((B, S_pad, D), out_dtype),
        grid_spec=grid_spec,
        compiler_params=pltpu.CompilerParams(
            dimension_semantics=("parallel", "parallel", "arbitrary"),
            vmem_limit_bytes=vmem_limit,
        ),
    )


def transformer_encoder_layer_batch_first(xb, params, nhead, *, q_tile=None):
    """xb: (batch, seq, dim) float32 -> (batch, seq, dim). Preferred entry point."""
    B, S, D = xb.shape
    F = params["w1"].shape[0]
    assert D % nhead == 0, "dim must be divisible by nhead"
    hd = D // nhead

    # per-generation tuning: 128-MiB parts (v5e/v6e) get bigger tiles and a higher limit
    vmem_cap = _tpu_vmem_capacity_bytes()
    if q_tile is None:
        q_tile = 256 if vmem_cap >= 100 * 1024 * 1024 else 128
    vmem_limit = min(vmem_cap * 3 // 4, 100 * 1024 * 1024)

    # query tiling + sequence padding (handles ViT-style S=197 with a masked key pad)
    tq = _round_up(S, 8) if S <= q_tile else q_tile
    S_pad = _round_up(S, tq)
    n_q = S_pad // tq
    tf = _pick_f_tile(F)
    n_f = F // tf

    xb_pad = xb if S_pad == S else jnp.pad(xb, ((0, 0), (0, S_pad - S), (0, 0)))
    k, v = _hoisted_kv(xb_pad, params, nhead)        # hoisted out of the kernel (one GEMM)
    weights = _prep_weights(params, nhead)

    call = _build_call(B, S_pad, D, hd, tq, tf, n_q, n_f, nhead, S, xb.dtype, vmem_limit)
    out = call(xb_pad, k, v, *weights)
    return out if S_pad == S else out[:, :S, :]


def transformer_encoder_layer(x, params, nhead, *, q_tile=None):
    """Module-compatible interface: x is (seq, batch, dim) as in batch_first=False MHA.

    The two transposes are only for interface parity with the PyTorch module; keep
    activations batch-first and call transformer_encoder_layer_batch_first directly
    in a real model.
    """
    xb = jnp.transpose(x, (1, 0, 2))                  # (B, S, D)
    out = transformer_encoder_layer_batch_first(xb, params, nhead, q_tile=q_tile)
    return jnp.transpose(out, (1, 0, 2))              # back to (S, B, D)


# --------------------------------------------------------------------------------------
# Pure-JAX f32 reference (for correctness check)
# --------------------------------------------------------------------------------------
def reference(x, p, nhead):
    S, B, D = x.shape
    hd = D // nhead
    scale = 1.0 / math.sqrt(hd)

    def ln(y, g, b):
        mu = jnp.mean(y, -1, keepdims=True)
        var = jnp.mean((y - mu) ** 2, -1, keepdims=True)
        return (y - mu) / jnp.sqrt(var + 1e-5) * g + b

    qkv = jnp.einsum("sbd,ed->sbe", x, p["win"]) + p["bin"]
    q, k, v = jnp.split(qkv, 3, axis=-1)
    q = q.reshape(S, B, nhead, hd) * scale
    k = k.reshape(S, B, nhead, hd)
    v = v.reshape(S, B, nhead, hd)
    s = jnp.einsum("qbhd,kbhd->bhqk", q, k)
    a = jax.nn.softmax(s, axis=-1)
    o = jnp.einsum("bhqk,kbhd->qbhd", a, v).reshape(S, B, D)
    attn = jnp.einsum("sbd,ed->sbe", o, p["wout"]) + p["bout"]

    x1 = ln(x + attn, p["g1"], p["be1"])
    h = jax.nn.relu(jnp.einsum("sbd,fd->sbf", x1, p["w1"]) + p["b1"])
    h2 = jnp.einsum("sbf,df->sbd", h, p["w2"]) + p["b2"]
    return ln(x1 + h2, p["g2"], p["be2"])


# --------------------------------------------------------------------------------------
if __name__ == "__main__":
    dim, nhead, dim_lin = 64, 4, 128
    key = jax.random.PRNGKey(0)
    ks = jax.random.split(key, 10)

    params = {
        "win":  0.05 * jax.random.normal(ks[0], (3 * dim, dim), jnp.float32),
        "bin":  0.01 * jax.random.normal(ks[1], (3 * dim,), jnp.float32),
        "wout": 0.05 * jax.random.normal(ks[2], (dim, dim), jnp.float32),
        "bout": 0.01 * jax.random.normal(ks[3], (dim,), jnp.float32),
        "w1":   0.05 * jax.random.normal(ks[4], (dim_lin, dim), jnp.float32),
        "b1":   0.01 * jax.random.normal(ks[5], (dim_lin,), jnp.float32),
        "w2":   0.05 * jax.random.normal(ks[6], (dim, dim_lin), jnp.float32),
        "b2":   0.01 * jax.random.normal(ks[7], (dim,), jnp.float32),
        "g1":   jnp.ones((dim,), jnp.float32),
        "be1":  jnp.zeros((dim,), jnp.float32),
        "g2":   jnp.ones((dim,), jnp.float32),
        "be2":  jnp.zeros((dim,), jnp.float32),
    }

    # --- main check: aligned sequence length --------------------------------------------
    seq, batch = 16, 2
    x = jax.random.normal(ks[8], (seq, batch, dim), jnp.float32)
    out = jax.block_until_ready(transformer_encoder_layer(x, params, nhead))
    ref = reference(x, params, nhead)
    assert out.shape == (seq, batch, dim)
    err = float(jnp.max(jnp.abs(out - ref)))
    # bf16 GEMMs + approx-reciprocal softmax loosen the pure-f32 tolerance
    assert jnp.allclose(out, ref, atol=3e-2, rtol=3e-2), f"mismatch vs reference (max_err={err})"

    # --- second check: sequence needing padding + in-kernel key masking (ViT S=197 style)
    seq2 = 12
    x2 = jax.random.normal(ks[9], (seq2, 1, dim), jnp.float32)
    out2 = jax.block_until_ready(transformer_encoder_layer(x2, params, nhead))
    ref2 = reference(x2, params, nhead)
    assert out2.shape == (seq2, 1, dim)
    err2 = float(jnp.max(jnp.abs(out2 - ref2)))
    assert jnp.allclose(out2, ref2, atol=3e-2, rtol=3e-2), f"padded-case mismatch (max_err={err2})"

    print("KERNEL_OK")
</pallas_src>

<mosaic_0001>
module attributes {stable_mosaic.version = 11 : i64} {
  func.func @_encoder_layer_kernel(%arg0: i32, %arg1: i32, %arg2: i32, %arg3: memref<1x16x64xf32, #tpu.memory_space<vmem>>, %arg4: memref<1x4x16x16xbf16, #tpu.memory_space<vmem>>, %arg5: memref<1x4x16x16xbf16, #tpu.memory_space<vmem>>, %arg6: memref<64x64xbf16, #tpu.memory_space<vmem>>, %arg7: memref<1x64xf32, #tpu.memory_space<vmem>>, %arg8: memref<64x64xbf16, #tpu.memory_space<vmem>>, %arg9: memref<1x64xf32, #tpu.memory_space<vmem>>, %arg10: memref<64x128xbf16, #tpu.memory_space<vmem>>, %arg11: memref<1x128xf32, #tpu.memory_space<vmem>>, %arg12: memref<128x64xbf16, #tpu.memory_space<vmem>>, %arg13: memref<1x64xf32, #tpu.memory_space<vmem>>, %arg14: memref<1x64xf32, #tpu.memory_space<vmem>>, %arg15: memref<1x64xf32, #tpu.memory_space<vmem>>, %arg16: memref<1x64xf32, #tpu.memory_space<vmem>>, %arg17: memref<1x64xf32, #tpu.memory_space<vmem>>, %arg18: memref<1x16x64xf32, #tpu.memory_space<vmem>>, %arg19: memref<16x64xf32, #tpu.memory_space<vmem>>, %arg20: memref<16x64xf32, #tpu.memory_space<vmem>>, %arg21: memref<16x64xbf16, #tpu.memory_space<vmem>>, %arg22: memref<4x16x16xbf16, #tpu.memory_space<vmem>>, %arg23: memref<4x16x16xbf16, #tpu.memory_space<vmem>>) attributes {dimension_semantics = [#tpu.dimension_semantics<parallel>, #tpu.dimension_semantics<parallel>, #tpu.dimension_semantics<arbitrary>], iteration_bounds = array<i64: 2, 1, 1>, scalar_prefetch = 0 : i64, scratch_operands = 5 : i64, tpu.core_type = #tpu.core_type<tc>, window_params = [{transform_indices = @transform_0, window_bounds = array<i64: 1, 16, 64>}, {transform_indices = @transform_1, window_bounds = array<i64: 1, 4, 16, 16>}, {transform_indices = @transform_2, window_bounds = array<i64: 1, 4, 16, 16>}, {pipeline_mode = #tpu.pipeline_mode<synchronous>, transform_indices = @transform_3, window_bounds = array<i64: 64, 64>}, {pipeline_mode = #tpu.pipeline_mode<synchronous>, transform_indices = @transform_4, window_bounds = array<i64: 1, 64>}, {pipeline_mode = #tpu.pipeline_mode<synchronous>, transform_indices = @transform_5, window_bounds = array<i64: 64, 64>}, {pipeline_mode = #tpu.pipeline_mode<synchronous>, transform_indices = @transform_6, window_bounds = array<i64: 1, 64>}, {transform_indices = @transform_7, window_bounds = array<i64: 64, 128>}, {transform_indices = @transform_8, window_bounds = array<i64: 1, 128>}, {transform_indices = @transform_9, window_bounds = array<i64: 128, 64>}, {pipeline_mode = #tpu.pipeline_mode<synchronous>, transform_indices = @transform_10, window_bounds = array<i64: 1, 64>}, {pipeline_mode = #tpu.pipeline_mode<synchronous>, transform_indices = @transform_11, window_bounds = array<i64: 1, 64>}, {pipeline_mode = #tpu.pipeline_mode<synchronous>, transform_indices = @transform_12, window_bounds = array<i64: 1, 64>}, {pipeline_mode = #tpu.pipeline_mode<synchronous>, transform_indices = @transform_13, window_bounds = array<i64: 1, 64>}, {pipeline_mode = #tpu.pipeline_mode<synchronous>, transform_indices = @transform_14, window_bounds = array<i64: 1, 64>}, {transform_indices = @transform_15, window_bounds = array<i64: 1, 16, 64>}]} {
    %c0_i32 = arith.constant 0 : i32
    %0 = arith.cmpi eq, %arg2, %c0_i32 : i32
    %1 = arith.extui %0 : i1 to i32
    %c0_i32_0 = arith.constant 0 : i32
    %2 = arith.cmpi ne, %1, %c0_i32_0 : i32
    scf.if %2 {
      %c0_16 = arith.constant 0 : index
      %c0_17 = arith.constant 0 : index
      %c0_18 = arith.constant 0 : index
      %21 = vector.load %arg3[%c0_16, %c0_17, %c0_18] : memref<1x16x64xf32, #tpu.memory_space<vmem>>, vector<1x16x64xf32>
      %22 = vector.shape_cast %21 : vector<1x16x64xf32> to vector<16x64xf32>
      %23 = arith.truncf %22 : vector<16x64xf32> to vector<16x64xbf16>
      %c0_19 = arith.constant 0 : index
      %c0_20 = arith.constant 0 : index
      %24 = vector.load %arg6[%c0_19, %c0_20] : memref<64x64xbf16, #tpu.memory_space<vmem>>, vector<64x64xbf16>
      %cst_21 = arith.constant dense<0.000000e+00> : vector<16x64xf32>
      %25 = tpu.matmul %23, %24, %cst_21 {dimension_numbers = #tpu.dot_dimension_numbers<[1], [0], [0], [1], [0, 0, 1, 1], [], []>} : vector<16x64xbf16>, vector<64x64xbf16>, vector<16x64xf32> -> vector<16x64xf32>
      %c0_22 = arith.constant 0 : index
      %c0_23 = arith.constant 0 : index
      %26 = vector.load %arg7[%c0_22, %c0_23] : memref<1x64xf32, #tpu.memory_space<vmem>>, vector<1x64xf32>
      %27 = vector.broadcast %26 : vector<1x64xf32> to vector<16x64xf32>
      %28 = arith.addf %25, %27 : vector<16x64xf32>
      %29 = arith.truncf %28 : vector<16x64xf32> to vector<16x64xbf16>
      %30 = vector.extract_strided_slice %29 {offsets = [0, 0], sizes = [16, 16], strides = [1, 1]} : vector<16x64xbf16> to vector<16x16xbf16>
      %c0_24 = arith.constant 0 : index
      %c0_25 = arith.constant 0 : index
      %c0_26 = arith.constant 0 : index
      %31 = vector.load %arg22[%c0_24, %c0_25, %c0_26] : memref<4x16x16xbf16, #tpu.memory_space<vmem>>, vector<1x16x16xbf16>
      %32 = vector.shape_cast %31 : vector<1x16x16xbf16> to vector<16x16xbf16>
      %33 = vector.shape_cast %30 : vector<16x16xbf16> to vector<1x16x16xbf16>
      tpu.vector_store %arg22[%c0_24, %c0_25, %c0_26], %33 {strides = array<i32>} : memref<4x16x16xbf16, #tpu.memory_space<vmem>>, vector<1x16x16xbf16>,
      %34 = vector.extract_strided_slice %29 {offsets = [0, 16], sizes = [16, 16], strides = [1, 1]} : vector<16x64xbf16> to vector<16x16xbf16>
      %c1 = arith.constant 1 : index
      %c0_27 = arith.constant 0 : index
      %c0_28 = arith.constant 0 : index
      %35 = vector.load %arg22[%c1, %c0_27, %c0_28] : memref<4x16x16xbf16, #tpu.memory_space<vmem>>, vector<1x16x16xbf16>
      %36 = vector.shape_cast %35 : vector<1x16x16xbf16> to vector<16x16xbf16>
      %37 = vector.shape_cast %34 : vector<16x16xbf16> to vector<1x16x16xbf16>
      tpu.vector_store %arg22[%c1, %c0_27, %c0_28], %37 {strides = array<i32>} : memref<4x16x16xbf16, #tpu.memory_space<vmem>>, vector<1x16x16xbf16>,
      %38 = vector.extract_strided_slice %29 {offsets = [0, 32], sizes = [16, 16], strides = [1, 1]} : vector<16x64xbf16> to vector<16x16xbf16>
      %c2 = arith.constant 2 : index
      %c0_29 = arith.constant 0 : index
      %c0_30 = arith.constant 0 : index
      %39 = vector.load %arg22[%c2, %c0_29, %c0_30] : memref<4x16x16xbf16, #tpu.memory_space<vmem>>, vector<1x16x16xbf16>
      %40 = vector.shape_cast %39 : vector<1x16x16xbf16> to vector<16x16xbf16>
      %41 = vector.shape_cast %38 : vector<16x16xbf16> to vector<1x16x16xbf16>
      tpu.vector_store %arg22[%c2, %c0_29, %c0_30], %41 {strides = array<i32>} : memref<4x16x16xbf16, #tpu.memory_space<vmem>>, vector<1x16x16xbf16>,
      %42 = vector.extract_strided_slice %29 {offsets = [0, 48], sizes = [16, 16], strides = [1, 1]} : vector<16x64xbf16> to vector<16x16xbf16>
      %c3 = arith.constant 3 : index
      %c0_31 = arith.constant 0 : index
      %c0_32 = arith.constant 0 : index
      %43 = vector.load %arg22[%c3, %c0_31, %c0_32] : memref<4x16x16xbf16, #tpu.memory_space<vmem>>, vector<1x16x16xbf16>
      %44 = vector.shape_cast %43 : vector<1x16x16xbf16> to vector<16x16xbf16>
      %45 = vector.shape_cast %42 : vector<16x16xbf16> to vector<1x16x16xbf16>
      tpu.vector_store %arg22[%c3, %c0_31, %c0_32], %45 {strides = array<i32>} : memref<4x16x16xbf16, #tpu.memory_space<vmem>>, vector<1x16x16xbf16>,
      %c0_i32_33 = arith.constant 0 : i32
      %c4_i32 = arith.constant 4 : i32
      %46 = arith.addi %c0_i32_33, %c4_i32 : i32
      %c1_i32 = arith.constant 1 : i32
      scf.for %arg24 = %c0_i32_33 to %46 step %c1_i32  : i32 {
        %91 = arith.index_cast %arg24 : i32 to index
        %c0_73 = arith.constant 0 : index
        %c0_74 = arith.constant 0 : index
        %92 = vector.load %arg22[%91, %c0_73, %c0_74] : memref<4x16x16xbf16, #tpu.memory_space<vmem>>, vector<1x16x16xbf16>
        %93 = vector.shape_cast %92 : vector<1x16x16xbf16> to vector<16x16xbf16>
        %c0_75 = arith.constant 0 : index
        %94 = arith.index_cast %arg24 : i32 to index
        %c0_76 = arith.constant 0 : index
        %c0_77 = arith.constant 0 : index
        %95 = vector.load %arg4[%c0_75, %94, %c0_76, %c0_77] : memref<1x4x16x16xbf16, #tpu.memory_space<vmem>>, vector<1x1x16x16xbf16>
        %96 = vector.shape_cast %95 : vector<1x1x16x16xbf16> to vector<16x16xbf16>
        %c0_78 = arith.constant 0 : index
        %97 = arith.index_cast %arg24 : i32 to index
        %c0_79 = arith.constant 0 : index
        %c0_80 = arith.constant 0 : index
        %98 = vector.load %arg5[%c0_78, %97, %c0_79, %c0_80] : memref<1x4x16x16xbf16, #tpu.memory_space<vmem>>, vector<1x1x16x16xbf16>
        %99 = vector.shape_cast %98 : vector<1x1x16x16xbf16> to vector<16x16xbf16>
        %cst_81 = arith.constant dense<0.000000e+00> : vector<16x16xf32>
        %100 = tpu.matmul %93, %96, %cst_81 {dimension_numbers = #tpu.dot_dimension_numbers<[1], [0], [0], [1], [0, 0, 1, 1], [], []>} : vector<16x16xbf16>, vector<16x16xbf16>, vector<16x16xf32> -> vector<16x16xf32>
        %cst_82 = arith.constant dense<0xFF800000> : vector<16xf32>
        %101 = vector.multi_reduction <maximumf>, %100, %cst_82 [1] : vector<16x16xf32> to vector<16xf32>
        %102 = vector.shape_cast %101 : vector<16xf32> to vector<16x1xf32>
        %103 = vector.broadcast %102 : vector<16x1xf32> to vector<16x16xf32>
        %104 = arith.subf %100, %103 : vector<16x16xf32>
        %105 = math.exp %104 : vector<16x16xf32>
        %cst_83 = arith.constant dense<0.000000e+00> : vector<16xf32>
        %106 = vector.multi_reduction <add>, %105, %cst_83 [1] : vector<16x16xf32> to vector<16xf32>
        %107 = vector.shape_cast %106 : vector<16xf32> to vector<16x1xf32>
        %108 = tpu.reciprocal %107 {approx = true} : vector<16x1xf32> -> vector<16x1xf32>
        %109 = vector.broadcast %108 : vector<16x1xf32> to vector<16x16xf32>
        %110 = arith.mulf %105, %109 : vector<16x16xf32>
        %111 = arith.truncf %110 : vector<16x16xf32> to vector<16x16xbf16>
        %cst_84 = arith.constant dense<0.000000e+00> : vector<16x16xf32>
        %112 = tpu.matmul %111, %99, %cst_84 {dimension_numbers = #tpu.dot_dimension_numbers<[1], [1], [0], [0], [0, 0, 1, 0], [], []>} : vector<16x16xbf16>, vector<16x16xbf16>, vector<16x16xf32> -> vector<16x16xf32>
        %113 = arith.truncf %112 : vector<16x16xf32> to vector<16x16xbf16>
        %114 = arith.index_cast %arg24 : i32 to index
        %c0_85 = arith.constant 0 : index
        %c0_86 = arith.constant 0 : index
        %115 = vector.load %arg23[%114, %c0_85, %c0_86] : memref<4x16x16xbf16, #tpu.memory_space<vmem>>, vector<1x16x16xbf16>
        %116 = vector.shape_cast %115 : vector<1x16x16xbf16> to vector<16x16xbf16>
        %117 = vector.shape_cast %113 : vector<16x16xbf16> to vector<1x16x16xbf16>
        tpu.vector_store %arg23[%114, %c0_85, %c0_86], %117 {strides = array<i32>} : memref<4x16x16xbf16, #tpu.memory_space<vmem>>, vector<1x16x16xbf16>,
      }
      %c4_i32_34 = arith.constant 4 : i32
      %c0_35 = arith.constant 0 : index
      %c0_36 = arith.constant 0 : index
      %c0_37 = arith.constant 0 : index
      %47 = vector.load %arg23[%c0_35, %c0_36, %c0_37] : memref<4x16x16xbf16, #tpu.memory_space<vmem>>, vector<1x16x16xbf16>
      %48 = vector.shape_cast %47 : vector<1x16x16xbf16> to vector<16x16xbf16>
      %c0_38 = arith.constant 0 : index
      %c0_39 = arith.constant 0 : index
      %49 = vector.load %arg21[%c0_38, %c0_39] : memref<16x64xbf16, #tpu.memory_space<vmem>>, vector<16x16xbf16>
      tpu.vector_store %arg21[%c0_38, %c0_39], %48 {strides = array<i32>} : memref<16x64xbf16, #tpu.memory_space<vmem>>, vector<16x16xbf16>,
      %c1_40 = arith.constant 1 : index
      %c0_41 = arith.constant 0 : index
      %c0_42 = arith.constant 0 : index
      %50 = vector.load %arg23[%c1_40, %c0_41, %c0_42] : memref<4x16x16xbf16, #tpu.memory_space<vmem>>, vector<1x16x16xbf16>
      %51 = vector.shape_cast %50 : vector<1x16x16xbf16> to vector<16x16xbf16>
      %c0_43 = arith.constant 0 : index
      %c16 = arith.constant 16 : index
      %52 = vector.load %arg21[%c0_43, %c16] : memref<16x64xbf16, #tpu.memory_space<vmem>>, vector<16x16xbf16>
      tpu.vector_store %arg21[%c0_43, %c16], %51 {strides = array<i32>} : memref<16x64xbf16, #tpu.memory_space<vmem>>, vector<16x16xbf16>,
      %c2_44 = arith.constant 2 : index
      %c0_45 = arith.constant 0 : index
      %c0_46 = arith.constant 0 : index
      %53 = vector.load %arg23[%c2_44, %c0_45, %c0_46] : memref<4x16x16xbf16, #tpu.memory_space<vmem>>, vector<1x16x16xbf16>
      %54 = vector.shape_cast %53 : vector<1x16x16xbf16> to vector<16x16xbf16>
      %c0_47 = arith.constant 0 : index
      %c32 = arith.constant 32 : index
      %55 = vector.load %arg21[%c0_47, %c32] : memref<16x64xbf16, #tpu.memory_space<vmem>>, vector<16x16xbf16>
      tpu.vector_store %arg21[%c0_47, %c32], %54 {strides = array<i32>} : memref<16x64xbf16, #tpu.memory_space<vmem>>, vector<16x16xbf16>,
      %c3_48 = arith.constant 3 : index
      %c0_49 = arith.constant 0 : index
      %c0_50 = arith.constant 0 : index
      %56 = vector.load %arg23[%c3_48, %c0_49, %c0_50] : memref<4x16x16xbf16, #tpu.memory_space<vmem>>, vector<1x16x16xbf16>
      %57 = vector.shape_cast %56 : vector<1x16x16xbf16> to vector<16x16xbf16>
      %c0_51 = arith.constant 0 : index
      %c48 = arith.constant 48 : index
      %58 = vector.load %arg21[%c0_51, %c48] : memref<16x64xbf16, #tpu.memory_space<vmem>>, vector<16x16xbf16>
      tpu.vector_store %arg21[%c0_51, %c48], %57 {strides = array<i32>} : memref<16x64xbf16, #tpu.memory_space<vmem>>, vector<16x16xbf16>,
      %c0_52 = arith.constant 0 : index
      %c0_53 = arith.constant 0 : index
      %59 = vector.load %arg21[%c0_52, %c0_53] : memref<16x64xbf16, #tpu.memory_space<vmem>>, vector<16x64xbf16>
      %c0_54 = arith.constant 0 : index
      %c0_55 = arith.constant 0 : index
      %60 = vector.load %arg8[%c0_54, %c0_55] : memref<64x64xbf16, #tpu.memory_space<vmem>>, vector<64x64xbf16>
      %cst_56 = arith.constant dense<0.000000e+00> : vector<16x64xf32>
      %61 = tpu.matmul %59, %60, %cst_56 {dimension_numbers = #tpu.dot_dimension_numbers<[1], [0], [0], [1], [0, 0, 1, 1], [], []>} : vector<16x64xbf16>, vector<64x64xbf16>, vector<16x64xf32> -> vector<16x64xf32>
      %c0_57 = arith.constant 0 : index
      %c0_58 = arith.constant 0 : index
      %62 = vector.load %arg9[%c0_57, %c0_58] : memref<1x64xf32, #tpu.memory_space<vmem>>, vector<1x64xf32>
      %63 = vector.broadcast %62 : vector<1x64xf32> to vector<16x64xf32>
      %64 = arith.addf %61, %63 : vector<16x64xf32>
      %65 = arith.addf %22, %64 : vector<16x64xf32>
      %c0_59 = arith.constant 0 : index
      %c0_60 = arith.constant 0 : index
      %66 = vector.load %arg14[%c0_59, %c0_60] : memref<1x64xf32, #tpu.memory_space<vmem>>, vector<1x64xf32>
      %c0_61 = arith.constant 0 : index
      %c0_62 = arith.constant 0 : index
      %67 = vector.load %arg15[%c0_61, %c0_62] : memref<1x64xf32, #tpu.memory_space<vmem>>, vector<1x64xf32>
      %cst_63 = arith.constant dense<0.000000e+00> : vector<16xf32>
      %68 = vector.multi_reduction <add>, %65, %cst_63 [1] : vector<16x64xf32> to vector<16xf32>
      %69 = vector.shape_cast %68 : vector<16xf32> to vector<16x1xf32>
      %cst_64 = arith.constant 6.400000e+01 : f32
      %70 = vector.broadcast %cst_64 : f32 to vector<16x1xf32>
      %71 = arith.divf %69, %70 : vector<16x1xf32>
      %72 = vector.broadcast %71 : vector<16x1xf32> to vector<16x64xf32>
      %73 = arith.subf %65, %72 : vector<16x64xf32>
      %74 = arith.mulf %73, %73 : vector<16x64xf32>
      %cst_65 = arith.constant dense<0.000000e+00> : vector<16xf32>
      %75 = vector.multi_reduction <add>, %74, %cst_65 [1] : vector<16x64xf32> to vector<16xf32>
      %76 = vector.shape_cast %75 : vector<16xf32> to vector<16x1xf32>
      %cst_66 = arith.constant 6.400000e+01 : f32
      %77 = vector.broadcast %cst_66 : f32 to vector<16x1xf32>
      %78 = arith.divf %76, %77 : vector<16x1xf32>
      %cst_67 = arith.constant 9.99999974E-6 : f32
      %79 = vector.broadcast %cst_67 : f32 to vector<16x1xf32>
      %80 = arith.addf %78, %79 : vector<16x1xf32>
      %81 = math.rsqrt %80 : vector<16x1xf32>
      %82 = vector.broadcast %81 : vector<16x1xf32> to vector<16x64xf32>
      %83 = arith.mulf %73, %82 : vector<16x64xf32>
      %84 = vector.broadcast %66 : vector<1x64xf32> to vector<16x64xf32>
      %85 = arith.mulf %83, %84 : vector<16x64xf32>
      %86 = vector.broadcast %67 : vector<1x64xf32> to vector<16x64xf32>
      %87 = arith.addf %85, %86 : vector<16x64xf32>
      %c0_68 = arith.constant 0 : index
      %c0_69 = arith.constant 0 : index
      %88 = vector.load %arg19[%c0_68, %c0_69] : memref<16x64xf32, #tpu.memory_space<vmem>>, vector<16x64xf32>
      tpu.vector_store %arg19[%c0_68, %c0_69], %87 {strides = array<i32>} : memref<16x64xf32, #tpu.memory_space<vmem>>, vector<16x64xf32>,
      %cst_70 = arith.constant 0.000000e+00 : f32
      %89 = vector.broadcast %cst_70 : f32 to vector<16x64xf32>
      %c0_71 = arith.constant 0 : index
      %c0_72 = arith.constant 0 : index
      %90 = vector.load %arg20[%c0_71, %c0_72] : memref<16x64xf32, #tpu.memory_space<vmem>>, vector<16x64xf32>
      tpu.vector_store %arg20[%c0_71, %c0_72], %89 {strides = array<i32>} : memref<16x64xf32, #tpu.memory_space<vmem>>, vector<16x64xf32>,
    } else {
    }
    %c0 = arith.constant 0 : index
    %c0_1 = arith.constant 0 : index
    %3 = vector.load %arg19[%c0, %c0_1] : memref<16x64xf32, #tpu.memory_space<vmem>>, vector<16x64xf32>
    %4 = arith.truncf %3 : vector<16x64xf32> to vector<16x64xbf16>
    %c0_2 = arith.constant 0 : index
    %c0_3 = arith.constant 0 : index
    %5 = vector.load %arg10[%c0_2, %c0_3] : memref<64x128xbf16, #tpu.memory_space<vmem>>, vector<64x128xbf16>
    %cst = arith.constant dense<0.000000e+00> : vector<16x128xf32>
    %6 = tpu.matmul %4, %5, %cst {dimension_numbers = #tpu.dot_dimension_numbers<[1], [0], [0], [1], [0, 0, 1, 1], [], []>} : vector<16x64xbf16>, vector<64x128xbf16>, vector<16x128xf32> -> vector<16x128xf32>
    %c0_4 = arith.constant 0 : index
    %c0_5 = arith.constant 0 : index
    %7 = vector.load %arg11[%c0_4, %c0_5] : memref<1x128xf32, #tpu.memory_space<vmem>>, vector<1x128xf32>
    %8 = vector.broadcast %7 : vector<1x128xf32> to vector<16x128xf32>
    %9 = arith.addf %6, %8 : vector<16x128xf32>
    %cst_6 = arith.constant 0.000000e+00 : f32
    %10 = vector.broadcast %cst_6 : f32 to vector<16x128xf32>
    %11 = arith.maximumf %9, %10 : vector<16x128xf32>
    %c0_7 = arith.constant 0 : index
    %c0_8 = arith.constant 0 : index
    %12 = vector.load %arg20[%c0_7, %c0_8] : memref<16x64xf32, #tpu.memory_space<vmem>>, vector<16x64xf32>
    %13 = arith.truncf %11 : vector<16x128xf32> to vector<16x128xbf16>
    %c0_9 = arith.constant 0 : index
    %c0_10 = arith.constant 0 : index
    %14 = vector.load %arg12[%c0_9, %c0_10] : memref<128x64xbf16, #tpu.memory_space<vmem>>, vector<128x64xbf16>
    %cst_11 = arith.constant dense<0.000000e+00> : vector<16x64xf32>
    %15 = tpu.matmul %13, %14, %cst_11 {dimension_numbers = #tpu.dot_dimension_numbers<[1], [0], [0], [1], [0, 0, 1, 1], [], []>} : vector<16x128xbf16>, vector<128x64xbf16>, vector<16x64xf32> -> vector<16x64xf32>
    %16 = arith.addf %12, %15 : vector<16x64xf32>
    %c0_12 = arith.constant 0 : index
    %c0_13 = arith.constant 0 : index
    %17 = vector.load %arg20[%c0_12, %c0_13] : memref<16x64xf32, #tpu.memory_space<vmem>>, vector<16x64xf32>
    tpu.vector_store %arg20[%c0_12, %c0_13], %16 {strides = array<i32>} : memref<16x64xf32, #tpu.memory_space<vmem>>, vector<16x64xf32>,
    %c0_i32_14 = arith.constant 0 : i32
    %18 = arith.cmpi eq, %arg2, %c0_i32_14 : i32
    %19 = arith.extui %18 : i1 to i32
    %c0_i32_15 = arith.constant 0 : i32
    %20 = arith.cmpi ne, %19, %c0_i32_15 : i32
    scf.if %20 {
      %c0_16 = arith.constant 0 : index
      %c0_17 = arith.constant 0 : index
      %21 = vector.load %arg20[%c0_16, %c0_17] : memref<16x64xf32, #tpu.memory_space<vmem>>, vector<16x64xf32>
      %c0_18 = arith.constant 0 : index
      %c0_19 = arith.constant 0 : index
      %22 = vector.load %arg13[%c0_18, %c0_19] : memref<1x64xf32, #tpu.memory_space<vmem>>, vector<1x64xf32>
      %23 = vector.broadcast %22 : vector<1x64xf32> to vector<16x64xf32>
      %24 = arith.addf %21, %23 : vector<16x64xf32>
      %c0_20 = arith.constant 0 : index
      %c0_21 = arith.constant 0 : index
      %25 = vector.load %arg19[%c0_20, %c0_21] : memref<16x64xf32, #tpu.memory_space<vmem>>, vector<16x64xf32>
      %26 = arith.addf %25, %24 : vector<16x64xf32>
      %c0_22 = arith.constant 0 : index
      %c0_23 = arith.constant 0 : index
      %27 = vector.load %arg16[%c0_22, %c0_23] : memref<1x64xf32, #tpu.memory_space<vmem>>, vector<1x64xf32>
      %c0_24 = arith.constant 0 : index
      %c0_25 = arith.constant 0 : index
      %28 = vector.load %arg17[%c0_24, %c0_25] : memref<1x64xf32, #tpu.memory_space<vmem>>, vector<1x64xf32>
      %cst_26 = arith.constant dense<0.000000e+00> : vector<16xf32>
      %29 = vector.multi_reduction <add>, %26, %cst_26 [1] : vector<16x64xf32> to vector<16xf32>
      %30 = vector.shape_cast %29 : vector<16xf32> to vector<16x1xf32>
      %cst_27 = arith.constant 6.400000e+01 : f32
      %31 = vector.broadcast %cst_27 : f32 to vector<16x1xf32>
      %32 = arith.divf %30, %31 : vector<16x1xf32>
      %33 = vector.broadcast %32 : vector<16x1xf32> to vector<16x64xf32>
      %34 = arith.subf %26, %33 : vector<16x64xf32>
      %35 = arith.mulf %34, %34 : vector<16x64xf32>
      %cst_28 = arith.constant dense<0.000000e+00> : vector<16xf32>
      %36 = vector.multi_reduction <add>, %35, %cst_28 [1] : vector<16x64xf32> to vector<16xf32>
      %37 = vector.shape_cast %36 : vector<16xf32> to vector<16x1xf32>
      %cst_29 = arith.constant 6.400000e+01 : f32
      %38 = vector.broadcast %cst_29 : f32 to vector<16x1xf32>
      %39 = arith.divf %37, %38 : vector<16x1xf32>
      %cst_30 = arith.constant 9.99999974E-6 : f32
      %40 = vector.broadcast %cst_30 : f32 to vector<16x1xf32>
      %41 = arith.addf %39, %40 : vector<16x1xf32>
      %42 = math.rsqrt %41 : vector<16x1xf32>
      %43 = vector.broadcast %42 : vector<16x1xf32> to vector<16x64xf32>
      %44 = arith.mulf %34, %43 : vector<16x64xf32>
      %45 = vector.broadcast %27 : vector<1x64xf32> to vector<16x64xf32>
      %46 = arith.mulf %44, %45 : vector<16x64xf32>
      %47 = vector.broadcast %28 : vector<1x64xf32> to vector<16x64xf32>
      %48 = arith.addf %46, %47 : vector<16x64xf32>
      %c0_31 = arith.constant 0 : index
      %c0_32 = arith.constant 0 : index
      %c0_33 = arith.constant 0 : index
      %49 = vector.load %arg18[%c0_31, %c0_32, %c0_33] : memref<1x16x64xf32, #tpu.memory_space<vmem>>, vector<1x16x64xf32>
      %50 = vector.shape_cast %49 : vector<1x16x64xf32> to vector<16x64xf32>
      %51 = vector.shape_cast %48 : vector<16x64xf32> to vector<1x16x64xf32>
      tpu.vector_store %arg18[%c0_31, %c0_32, %c0_33], %51 {strides = array<i32>} : memref<1x16x64xf32, #tpu.memory_space<vmem>>, vector<1x16x64xf32>,
    } else {
    }
    return
  }
  func.func @transform_0(%arg0: i32, %arg1: i32, %arg2: i32) -> (i32, i32, i32) {
    %c0_i32 = arith.constant 0 : i32
    %c0_i32_0 = arith.constant 0 : i32
    return %arg0, %arg1, %c0_i32 : i32, i32, i32
  }
  func.func @transform_1(%arg0: i32, %arg1: i32, %arg2: i32) -> (i32, i32, i32, i32) {
    %c0_i32 = arith.constant 0 : i32
    %c0_i32_0 = arith.constant 0 : i32
    %c0_i32_1 = arith.constant 0 : i32
    %c0_i32_2 = arith.constant 0 : i32
    return %arg0, %c0_i32, %c0_i32_0, %c0_i32_1 : i32, i32, i32, i32
  }
  func.func @transform_2(%arg0: i32, %arg1: i32, %arg2: i32) -> (i32, i32, i32, i32) {
    %c0_i32 = arith.constant 0 : i32
    %c0_i32_0 = arith.constant 0 : i32
    %c0_i32_1 = arith.constant 0 : i32
    %c0_i32_2 = arith.constant 0 : i32
    return %arg0, %c0_i32, %c0_i32_0, %c0_i32_1 : i32, i32, i32, i32
  }
  func.func @transform_3(%arg0: i32, %arg1: i32, %arg2: i32) -> (i32, i32) {
    %c0_i32 = arith.constant 0 : i32
    %c0_i32_0 = arith.constant 0 : i32
    %c0_i32_1 = arith.constant 0 : i32
    return %c0_i32, %c0_i32_0 : i32, i32
  }
  func.func @transform_4(%arg0: i32, %arg1: i32, %arg2: i32) -> (i32, i32) {
    %c0_i32 = arith.constant 0 : i32
    %c0_i32_0 = arith.constant 0 : i32
    %c0_i32_1 = arith.constant 0 : i32
    return %c0_i32, %c0_i32_0 : i32, i32
  }
  func.func @transform_5(%arg0: i32, %arg1: i32, %arg2: i32) -> (i32, i32) {
    %c0_i32 = arith.constant 0 : i32
    %c0_i32_0 = arith.constant 0 : i32
    %c0_i32_1 = arith.constant 0 : i32
    return %c0_i32, %c0_i32_0 : i32, i32
  }
  func.func @transform_6(%arg0: i32, %arg1: i32, %arg2: i32) -> (i32, i32) {
    %c0_i32 = arith.constant 0 : i32
    %c0_i32_0 = arith.constant 0 : i32
    %c0_i32_1 = arith.constant 0 : i32
    return %c0_i32, %c0_i32_0 : i32, i32
  }
  func.func @transform_7(%arg0: i32, %arg1: i32, %arg2: i32) -> (i32, i32) {
    %c0_i32 = arith.constant 0 : i32
    %c0_i32_0 = arith.constant 0 : i32
    return %c0_i32, %arg2 : i32, i32
  }
  func.func @transform_8(%arg0: i32, %arg1: i32, %arg2: i32) -> (i32, i32) {
    %c0_i32 = arith.constant 0 : i32
    %c0_i32_0 = arith.constant 0 : i32
    return %c0_i32, %arg2 : i32, i32
  }
  func.func @transform_9(%arg0: i32, %arg1: i32, %arg2: i32) -> (i32, i32) {
    %c0_i32 = arith.constant 0 : i32
    %c0_i32_0 = arith.constant 0 : i32
    return %arg2, %c0_i32 : i32, i32
  }
  func.func @transform_10(%arg0: i32, %arg1: i32, %arg2: i32) -> (i32, i32) {
    %c0_i32 = arith.constant 0 : i32
    %c0_i32_0 = arith.constant 0 : i32
    %c0_i32_1 = arith.constant 0 : i32
    return %c0_i32, %c0_i32_0 : i32, i32
  }
  func.func @transform_11(%arg0: i32, %arg1: i32, %arg2: i32) -> (i32, i32) {
    %c0_i32 = arith.constant 0 : i32
    %c0_i32_0 = arith.constant 0 : i32
    %c0_i32_1 = arith.constant 0 : i32
    return %c0_i32, %c0_i32_0 : i32, i32
  }
  func.func @transform_12(%arg0: i32, %arg1: i32, %arg2: i32) -> (i32, i32) {
    %c0_i32 = arith.constant 0 : i32
    %c0_i32_0 = arith.constant 0 : i32
    %c0_i32_1 = arith.constant 0 : i32
    return %c0_i32, %c0_i32_0 : i32, i32
  }
  func.func @transform_13(%arg0: i32, %arg1: i32, %arg2: i32) -> (i32, i32) {
    %c0_i32 = arith.constant 0 : i32
    %c0_i32_0 = arith.constant 0 : i32
    %c0_i32_1 = arith.constant 0 : i32
    return %c0_i32, %c0_i32_0 : i32, i32
  }
  func.func @transform_14(%arg0: i32, %arg1: i32, %arg2: i32) -> (i32, i32) {
    %c0_i32 = arith.constant 0 : i32
    %c0_i32_0 = arith.constant 0 : i32
    %c0_i32_1 = arith.constant 0 : i32
    return %c0_i32, %c0_i32_0 : i32, i32
  }
  func.func @transform_15(%arg0: i32, %arg1: i32, %arg2: i32) -> (i32, i32, i32) {
    %c0_i32 = arith.constant 0 : i32
    %c0_i32_0 = arith.constant 0 : i32
    return %arg0, %arg1, %c0_i32 : i32, i32, i32
  }
}

</mosaic_0001>

<bundles_post_ra>
// kernel: tpu_custom_call.1
= control target key start
LH: loop header
LB: loop body
LE: loop exit
PB: predicated region body
PF: predicated region fallthrough
CT: control target
= control target key end

     0   :  { %s2708_s0 = inlined_call_operand.vmem [shape: f32[2,16,64], index: 0, kind: input, shape index: {}]   ;;  %s2709_s1 = inlined_call_operand.vmem [shape: bf16[2,4,16,16], index: 1, kind: input, shape index: {}]   ;;  %s2710_s2 = inlined_call_operand.hbm [shape: bf16[2,4,16,16], index: 2, kind: input, shape index: {}]   ;;  %s2711_s3 = inlined_call_operand.hbm [shape: bf16[64,64], index: 3, kind: input, shape index: {}]   ;;  %s2712_s4 = inlined_call_operand.vmem [shape: f32[1,64], index: 4, kind: input, shape index: {}]   ;;  %s2713_s5 = inlined_call_operand.hbm [shape: bf16[64,64], index: 5, kind: input, shape index: {}]   ;;  %s2714_s6 = inlined_call_operand.vmem [shape: f32[1,64], index: 6, kind: input, shape index: {}]   ;;  %s2715_s7 = inlined_call_operand.hbm [shape: bf16[64,128], index: 7, kind: input, shape index: {}]   ;;  %s2716_s8 = inlined_call_operand.hbm [shape: f32[1,128], index: 8, kind: input, shape index: {}]   ;;  %s2717_s9 = inlined_call_operand.vmem [shape: bf16[128,64], index: 9, kind: input, shape index: {}]   ;;  %s2718_s10 = inlined_call_operand.vmem [shape: f32[1,64], index: 10, kind: input, shape index: {}]   ;;  %s2719_s11 = inlined_call_operand.vmem [shape: f32[1,64], index: 11, kind: input, shape index: {}]   ;;  %s2720_s12 = inlined_call_operand.vmem [shape: f32[1,64], index: 12, kind: input, shape index: {}]   ;;  %s2721_s13 = inlined_call_operand.vmem [shape: f32[1,64], index: 13, kind: input, shape index: {}]   ;;  %s2722_s14 = inlined_call_operand.vmem [shape: f32[1,64], index: 14, kind: input, shape index: {}]   ;;  %s2723_s15 = inlined_call_operand.hbm [shape: f32[2,16,64], index: 15, kind: output, shape index: {}]  }
   0x1   :  { %2732 = sst [smem:[#allocation23_spill]] %s2708_s0 }
   0x2   :  { %2733 = sst [smem:[#allocation24_spill]] %s2712_s4 }
   0x3   :  { %2734 = sst [smem:[#allocation25_spill]] %s2714_s6 }
   0x4   :  { %2735 = sst [smem:[#allocation26_spill]] %s2717_s9 }
   0x5   :  { %2736 = sst [smem:[#allocation27_spill]] %s2718_s10 }
   0x6   :  { %2737 = sst [smem:[#allocation28_spill]] %s2719_s11 }
   0x7   :  { %2738 = sst [smem:[#allocation29_spill]] %s2720_s12 }
   0x8   :  { %2739 = sst [smem:[#allocation30_spill]] %s2721_s13 }
   0x9   :  { %2740 = sst [smem:[#allocation31_spill]] %s2722_s14 }
   0xa   :  { %2741 = sst [smem:[#allocation32_spill]] %s2723_s15 }
   0xb   :  { %20 = vsyncpa [#allocation8], 0 }
   0xc   :  { %22 = vsyncpa [#allocation8 + $0x1], 0 }
   0xd   :  { %23 = vsyncpa [#allocation11], 0 }
   0xe   :  { %24 = vsyncpa [#allocation14], 0 }
   0xf   :  { %25 = vsyncpa [#allocation9], 0 }
  0x10   :  { %27 = vsyncpa [#allocation9 + $0x1], 0  ;;  %s2246_s18 = smov 0   ;;  %s2248_s19 = smov 0  }
  0x11   :  { %s2250_s20 = smov 0   ;;  %s2252_s21 = smov 0  }
  0x12   :  { %s2254_s22 = smov 0   ;;  %s2256_s23 = smov 0  }
  0x13 LB: > { %2742 = sst [smem:[#allocation21_spill]] %s2120_s18  ;;  %s1571_s24 = sadd.s32 4294967295, %s2140_s23   ;;  %s2140_s23 = sphi %s2256_s23, %s33_s23   ;;  %s2136_s22 = sphi %s2254_s22, %s2776_s22   ;;  %s2132_s21 = sphi %s2252_s21, %s2775_s21   ;;  %s2128_s20 = sphi %s2250_s20, %s2774_s20   ;;  %s2124_s19 = sphi %s2248_s19, %s2773_s19   ;;  %s2120_s18 = sphi %s2246_s18, %s2772_s18  }
  0x14   : > { %s1572_s25 = sadd.s32 4294967294, %s2140_s23   ;;  %p126_p0 = scmp.ne.s32.totalorder %s2124_s19, %s2120_s18 }
  0x15   : > { %p2280_p1 = scmp.eq.s32.totalorder %s1571_s24, 0  ;;  %p2284_p2 = scmp.eq.s32.totalorder %s1571_s24, 1 }
  0x16   : > { %p425_p3 = scmp.eq.s32.totalorder %s1572_s25, 1  ;;  %p1573_p5 = scmp.ge.s32.totalorder %s2140_s23, 1 }
  0x17   : > { %s2743_s26 = scalar_select %p2280_p1, 1, 0 }
  0x18   : > { %s2744_s27 = scalar_select %p2284_p2, 1, 0 }
  0x19   : > { %p2290_p4 = por %p2280_p1, %p126_p0  ;;  %p2295_p6 = por %p425_p3, %p126_p0 }
  0x1a   : > { %p432_p7 = scmp.lt.s32.totalorder %s2140_s23, 3  ;;  %s2146_s16 = smov [#allocation10]  }
  0x1b   : > { %s2745_s28 = scalar_select %p2290_p4, 1, 0 }
  0x1c   : > { %s2746_s29 = scalar_select %p2295_p6, 1, 0 }
  0x1d   : > { %p2300_p8 = pnand %p1573_p5, %p432_p7  ;;  %s444_s17 = sshll.u32 %s2146_s16, 4  ;;  %s2304_s17 = int_to_ptr.vmem [resolvable:$true] %s444_s17 }
  0x1e   : > { %2747 = sst [smem:[#allocation22_spill]] %s2746_s29  ;;  %s2147_s25 = smov [#allocation13]  }
  0x1f   : > { %s2748_s30 = scalar_select %p2300_p8, 1, 0 }
  0x20   : > { %p1761_p9 = pneg %p2300_p8  ;;  %s478_s29 = sshll.u32 %s2147_s25, 4  ;;  %s2315_s29 = int_to_ptr.vmem [resolvable:$true] %s478_s29 }
  0x21   : > { %s2148_s18 = smov [#allocation12]   ;;  %s1904_s13 = scalar_lea.hbm %s2711_s3, 512 }
  0x22   : > { %p2311_p11 = pnand %p1761_p9, %p2280_p1  ;;  %s2317_s15 = sshll.u32 %s2148_s18, 4  ;;  %s461_s15 = int_to_ptr.vmem [resolvable:$true] %s2317_s15 }
  0x23   : > { %p1905_p12 = scmp.ne.s32.totalorder %s2711_s3, %s1904_s13  ;;  %p1911_p5 = scmp.lt.u32.totalorder %s1904_s13, %s2711_s3 }
  0x24   : > { %p2327_p13 = pneg %p2311_p11 }
  0x26   : > { %p1907_p0 = pnand %p2327_p13, %p1905_p12 }
  0x28   : > { %p1908_p3 = pneg %p1907_p0 }
  0x2a   : > { %p1913_p7 = pnand %p1911_p5, %p1908_p3 }
  0x2c   : > { %1916 = shalt.err (!%p1913_p7)
}
  0x2d   : > { %s1917_s10 = scalar_lea.vmem %s2304_s17, 512  ;;  %p1925_p1 = scmp.lt.s32.totalorder %s2304_s17, %s2304_s17 }
  0x2e   : > { %p1918_p9 = scmp.ne.s32.totalorder %s2304_s17, %s1917_s10  ;;  %p1926_p4 = scmp.lt.s32.totalorder %s1917_s10, %s1917_s10 }
  0x30   : > { %p1920_p10 = pnand %p1918_p9, %p2327_p13  ;;  %p1927_p12 = por %p1926_p4, %p1925_p1 }
  0x32   : > { %p1921_p6 = pneg %p1920_p10 }
  0x34   : > { %p1928_p0 = pnand %p1927_p12, %p1921_p6 }
  0x36   : > { %1931 = shalt.err (!%p1928_p0)
}
  0x37   : > { %s2149_s12 = smov 64   ;;  %s2150_s13 = smov 4  }
  0x38   : > { %1764 = dma.hbm_to_vmem [thread:$0]  (!%p2311_p11), %s2711_s3, 512, %s2304_s17, [#allocation11], %s2149_s12, %s2149_s12, %s2150_s13  }
  0x39   : > { %s1932_s10 = scalar_lea.hbm %s2715_s7, 512 }
  0x3a   : > { %p1933_p1 = scmp.ne.s32.totalorder %s2715_s7, %s1932_s10  ;;  %p1939_p10 = scmp.lt.u32.totalorder %s1932_s10, %s2715_s7 }
  0x3c   : > { %p1935_p4 = pnand %p1933_p1, %p2327_p13 }
  0x3e   : > { %p1936_p6 = pneg %p1935_p4 }
  0x40   : > { %p1941_p3 = pnand %p1939_p10, %p1936_p6 }
  0x42   : > { %1944 = shalt.err (!%p1941_p3)
}
  0x43   : > { %s1945_s17 = scalar_lea.vmem %s2315_s29, 512  ;;  %p1953_p12 = scmp.lt.s32.totalorder %s2315_s29, %s2315_s29 }
  0x44   : > { %p1946_p5 = scmp.ne.s32.totalorder %s2315_s29, %s1945_s17  ;;  %p1954_p0 = scmp.lt.s32.totalorder %s1945_s17, %s1945_s17 }
  0x46   : > { %p1948_p7 = pnand %p1946_p5, %p2327_p13  ;;  %p1955_p1 = por %p1954_p0, %p1953_p12 }
  0x48   : > { %p1949_p9 = pneg %p1948_p7 }
  0x4a   : > { %p1956_p4 = pnand %p1955_p1, %p1949_p9 }
  0x4c   : > { %1959 = shalt.err (!%p1956_p4)
}
  0x4d   : > { %1770 = dma.hbm_to_vmem [thread:$0]  (!%p2311_p11), %s2715_s7, 512, %s2315_s29, [#allocation14], %s2149_s12, %s2149_s12, %s2150_s13  }
  0x4e   : > { %s1960_s14 = scalar_lea.hbm %s2713_s5, 512 }
  0x4f   : > { %p1961_p6 = scmp.ne.s32.totalorder %s2713_s5, %s1960_s14  ;;  %p1967_p5 = scmp.lt.u32.totalorder %s1960_s14, %s2713_s5 }
  0x51   : > { %p1963_p10 = pnand %p1961_p6, %p2327_p13 }
  0x53   : > { %p1964_p3 = pneg %p1963_p10 }
  0x55   : > { %p1969_p7 = pnand %p1967_p5, %p1964_p3 }
  0x57   : > { %1972 = shalt.err (!%p1969_p7)
}
  0x58   : > { %s1973_s17 = scalar_lea.vmem %s461_s15, 512  ;;  %p1981_p1 = scmp.lt.s32.totalorder %s461_s15, %s461_s15 }
  0x59   : > { %p1974_p9 = scmp.ne.s32.totalorder %s461_s15, %s1973_s17  ;;  %p1982_p4 = scmp.lt.s32.totalorder %s1973_s17, %s1973_s17 }
  0x5b   : > { %p1976_p12 = pnand %p1974_p9, %p2327_p13  ;;  %p1983_p8 = por %p1982_p4, %p1981_p1 }
  0x5d   : > { %p1977_p0 = pneg %p1976_p12 }
  0x5f   : > { %p1984_p2 = pnand %p1983_p8, %p1977_p0 }
  0x61   : > { %1987 = shalt.err (!%p1984_p2)
}
  0x62   : > { %1767 = dma.hbm_to_vmem [thread:$0]  (!%p2311_p11), %s2713_s5, 512, %s461_s15, [#allocation11], %s2149_s12, %s2149_s12, %s2150_s13  }
  0x63   : > { %s2151_s4 = smov [#allocation15]   ;;  %s1988_s16 = scalar_lea.hbm %s2716_s8, 16 }
  0x64   : > { %s494_s6 = sshll.u32 %s2151_s4, 4  ;;  %p1989_p2 = scmp.ne.s32.totalorder %s2716_s8, %s1988_s16  ;;  %s495_s6 = int_to_ptr.vmem [resolvable:$true] %s494_s6 }
  0x65   : > { %p1995_p10 = scmp.lt.u32.totalorder %s1988_s16, %s2716_s8 }
  0x66   : > { %p1991_p8 = pnand %p1989_p2, %p2327_p13 }
  0x68   : > { %p1992_p6 = pneg %p1991_p8 }
  0x6a   : > { %p1997_p3 = pnand %p1995_p10, %p1992_p6 }
  0x6c   : > { %2000 = shalt.err (!%p1997_p3)
}
  0x6d   : > { %s2001_s15 = scalar_lea.vmem %s495_s6, 16  ;;  %s2008_s29 = scalar_lea.vmem %s495_s6, 32 }
  0x6e   : > { %p2002_p5 = scmp.ne.s32.totalorder %s495_s6, %s2001_s15  ;;  %p2009_p12 = scmp.lt.s32.totalorder %s495_s6, %s495_s6 }
  0x6f   : > { %p2010_p0 = scmp.lt.s32.totalorder %s2008_s29, %s2001_s15 }
  0x70   : > { %p2004_p7 = pnand %p2002_p5, %p2327_p13 }
  0x71   : > { %p2011_p1 = por %p2010_p0, %p2009_p12 }
  0x72   : > { %p2005_p9 = pneg %p2004_p7 }
  0x74   : > { %p2012_p4 = pnand %p2011_p1, %p2005_p9 }
  0x76   : > { %2015 = shalt.err (!%p2012_p4)
}
  0x77   : > { %1773 = dma.hbm_to_vmem [thread:$0]  (!%p2311_p11), %s2716_s8, 16, %s495_s6, [#allocation14]  }
  0x78   : > { %s52_s11 = sadd.s32 1, %s2136_s22  ;;  %s113_s9 = sadd.s32 1, %s2128_s20 }
  0x79   : > { %p54_p13 = scmp.ge.s32.totalorder %s52_s11, 2  ;;  %p120_p2 = scmp.ne.s32.totalorder %s2128_s20, %s2124_s19 }
  0x7a   : > { %p121_p8 = scmp.eq.s32.totalorder %s2140_s23, 0  ;;  %p1786_p6 = scmp.lt.s32.totalorder %s2140_s23, 2 }
  0x7b   : > { %s2778_s11 = smov (%p54_p13, %s52_s11), 0  ;;  %p2751_p3 = scmp.ne.s32.totalorder %s2744_s27, 0 }
  0x7c   : > { %p122_p10 = por %p121_p8, %p120_p2  ;;  %s110_s14 = ssub.s32 %s2136_s22, %s2778_s11 }
  0x7d   : > { %p2427_p5 = por %p2751_p3, %p120_p2  ;;  %s550_s16 = sand.u32 1, %s2128_s20  }
  0x7e   : > { %p111_p7 = scmp.eq.s32.totalorder %s110_s14, 0  ;;  %s1580_s6 = sshll.u32 %s550_s16, 5 }
  0x7f   : > { %s1639_s25 = sshll.u32 %s2136_s22, 9  ;;  %s554_s27 = scalar_lea.vmem [#allocation7], %s1580_s6 }
  0x80   : > { %s2436_s18 = scalar_select %p111_p7, %s2128_s20, %s113_s9  }
  0x81   : > { %s2441_s15 = scalar_lea.hbm %s2710_s2, %s1639_s25  ;;  %s561_s29 = sshll.u32 %s554_s27, 4  ;;  %s2449_s29 = int_to_ptr.vmem [resolvable:$true] %s561_s29 }
  0x82   : > { %p2445_p11 = pnand %p1786_p6, %p122_p10  ;;  %s2451_s4 = scalar_lea.sflag [#allocation8], %s550_s16 }
  0x83   : > { %s2016_s9 = scalar_lea.hbm %s2441_s15, 512  ;;  %s2021_s25 = scalar_lea.hbm %s2710_s2, 1024 }
  0x84   : > { %p2017_p9 = scmp.ne.s32.totalorder %s2441_s15, %s2016_s9  ;;  %p2018_p12 = pneg %p2445_p11 }
  0x85   : > { %p2022_p4 = scmp.lt.u32.totalorder %s2441_s15, %s2710_s2  ;;  %p2023_p13 = scmp.lt.u32.totalorder %s2021_s25, %s2016_s9 }
  0x86   : > { %p2019_p0 = pnand %p2018_p12, %p2017_p9  ;;  %p2025_p8 = scmp.lt.u32.totalorder %s2016_s9, %s2441_s15 }
  0x87   : > { %p2024_p2 = por %p2023_p13, %p2022_p4 }
  0x88   : > { %p2020_p1 = pneg %p2019_p0 }
  0x89   : > { %p2026_p6 = por %p2025_p8, %p2024_p2 }
  0x8b   : > { %p2027_p10 = pnand %p2026_p6, %p2020_p1 }
  0x8d   : > { %2030 = shalt.err (!%p2027_p10)
}
  0x8e   : > { %s2031_s16 = scalar_lea.vmem %s2449_s29, 512  ;;  %s2152_s27 = smov [#allocation7]  }
  0x8f   : > { %p2032_p3 = scmp.ne.s32.totalorder %s2449_s29, %s2031_s16  ;;  %s2036_s14 = sshll.u32 %s2152_s27, 4  ;;  %s2037_s14 = int_to_ptr.vmem [resolvable:$false] %s2036_s14 }
  0x90   : > { %s2038_s6 = scalar_lea.vmem %s2037_s14, 1024  ;;  %p2039_p0 = scmp.lt.s32.totalorder %s2449_s29, %s2037_s14 }
  0x91   : > { %p2034_p7 = pnand %p2032_p3, %p2018_p12  ;;  %p2040_p4 = scmp.lt.s32.totalorder %s2038_s6, %s2031_s16 }
  0x93   : > { %p2035_p9 = pneg %p2034_p7  ;;  %p2041_p13 = por %p2040_p4, %p2039_p0 }
  0x95   : > { %p2042_p2 = pnand %p2041_p13, %p2035_p9 }
  0x97   : > { %2045 = shalt.err (!%p2042_p2)
}
  0x98   : > { %1777 = dma.hbm_to_vmem [thread:$0]  (!%p2445_p11), %s2441_s15, 512, %s2449_s29, %s2451_s4, %s2149_s12, %s2149_s12, %s2150_s13  }
  0x99   : > { %p2754_p12 = scmp.ne.s32.totalorder %s2748_s30, 0 }
  0x9a   : > { %s2485_s9 = sand.u32 (!%p2754_p12), 1, %s2124_s19   ;;  %p2755_p1 = scmp.ne.s32.totalorder (!%p2754_p12), %s2745_s28, 0 }
  0x9b   : > { %573 = sbr.rel (%p2754_p12) target bundleno = 2731 (0xaab), region = 80  ;;  %s1584_s25 = sshll.u32 (!%p2754_p12), %s2485_s9, 5 }
  0x9c   : > { %s576_s10 = scalar_lea.sflag (!%p2754_p12), [#allocation8], %s2485_s9  ;;  %s2489_s17 = scalar_lea.vmem (!%p2754_p12), [#allocation7], %s1584_s25 }
  0xa2   : > { %2103 = dma.done.wait (%p2755_p1), %s576_s10, 512  }
  0xa3   : > { %2105 = vsyncadd (%p2755_p1), %s576_s10, 4294966784  ;;  %p2756_p11 = scmp.ne.s32.totalorder %s2743_s26, 0 }
  0xa5   : > { %2107 = dma.done.wait (%p2756_p11), [#allocation11], 1024  }
  0xa6   : > { %2109 = vsyncadd (%p2756_p11), [#allocation11], 4294966272 }
  0xa7   : > { %2111 = dma.done.wait (%p2756_p11), [#allocation14], 528  }
  0xa8   : > { %2113 = vsyncadd (%p2756_p11), [#allocation14], 4294966768  ;;  %s1589_s30 = sshll.u32 %s2485_s9, 4  ;;  %p662_p8 = scmp.lt.s32.totalorder %s2132_s21, 1  ;;  %v2153_v0 = vmov 0.0   ;;  %vm2154_vm0 = vmmov 0  }
  0xa9   : > { %1673 = vmatprep.subr.bf16.mxu0 %v2153_v0  ;;  %1681 = vmatprep.mubr.msk.bf16.mxu0 %vm2154_vm0, %v2153_v0  ;;  %v1866_v1 = vld [vmem:[#allocation10] sm:$0xff]   ;;  %v1867_v2 = vld [vmem:[#allocation10 + $0x8] sm:$0xff]   ;;  %v1868_v3 = vld [vmem:[#allocation10 + $0x10] sm:$0xff]   ;;  %s2757_s16 = sld [smem:[#allocation23_spill]]  ;;  %vm730_vm1 = vcmask 523264   ;;  %s2758_s25 = sld [smem:[#allocation24_spill]] }
  0xaa   : > { %s663_s28 = scalar_select %p662_p8, %s2132_s21, 1  ;;  %1674 = vmatpush3.bf16.msra.mxu0 %v1866_v1  ;;  %v1869_v4 = vld [vmem:[#allocation10 + $0x18] sm:$0xff]   ;;  %vm776_vm2 = vcmask 130048  }
  0xab   : > { %1675 = vmatprep.subr.bf16.mxu0 %v2153_v0  ;;  %s2155_s10 = smov 80   ;;  %s2536_s13 = scalar_lea.vmem [#allocation16], %s1589_s30 }
  0xac   : > { %s1641_s12 = sshll.u32 %s663_s28, 5  ;;  %s1640_s26 = sshll.u32 %s663_s28, 4 }
  0xad   : > { %s2512_s29 = scalar_lea.vmem %s2709_s1, %s1641_s12  ;;  %s2156_s28 = smov 112  }
  0xae   : > { %1676 = vmatpush3.bf16.msra.mxu0 %v1867_v2  ;;  %s2157_s12 = smov 96   ;;  %s2538_s15 = smov 0  }
  0xaf   : > { %1677 = vmatprep.subr.bf16.mxu0 %v2153_v0  ;;  %s669_s27 = scalar_lea.vmem %s2757_s16, %s1640_s26  ;;  %v1594_v8 = vld [vmem:[%s2758_s25] ss:$0 sm:$0xff] }
  0xb0   : > { %v2519_v5 = vld [vmem:[%s669_s27] sm:$0xff]  ;;  %v2521_v6 = vld [vmem:[%s669_s27 + $0x8] sm:$0xff] }
  0xb1   : > { %v690_v7 = vpack.c.bf16 %v2521_v6, %v2519_v5 }
  0xb2   : > { %1678 = vmatpush3.bf16.msra.mxu0 %v1868_v3 }
  0xb3   : > { %1679 = vmatprep.subr.bf16.mxu0 %v2153_v0 }
  0xb6   : > { %1680 = vmatpush3.bf16.msra.mxu0 %v1869_v4 }
  0xb9   : > { %1682 = vmatmul.mubr.msk.bf16.vlgmr.msra.gmra.mrb[0].mxu0 %vm730_vm1, %v690_v7 }
 0x18c   : > { %v768_v9 = vpop.f32.mrb[0].mxu0 }
 0x18d   : > { %v1683_v10 = vpop.f32.mrb[1].mxu0  ;;  %v769_v12 = vadd.f32 %v1594_v8, %v768_v9 }
 0x18e   : > { %v771_v11 = vpop.f32.mrb[2].mxu0 }
 0x18f   : > { %v772_v13 = vadd.f32 %v1594_v8, %v771_v11  ;;  %v1684_v14 = vpop.f32.mrb[3].mxu0 }
 0x191   : > { %v775_v15 = vpack.c.bf16 %v772_v13, %v769_v12 }
 0x193   : > { %789 = vrot.lane.b32.xlu1 %v775_v15, %s2155_s10  ;;  %779 = vrot.lane.b32.xlu0 %v775_v15, %s2156_s28  ;;  %777 = vst.msk [vmem:[#allocation5] sm:$0xff] %vm776_vm2, %v775_v15 }
 0x197   : > { %784 = vrot.lane.b32.xlu0 %v775_v15, %s2157_s12 }
 0x205   : > { %v790_v16 = vpop.permute.xlu1 %789  ;;  %v780_v17 = vpop.permute.xlu0 %779 }
 0x206   : > { %793 = vst.msk [vmem:[#allocation5 + $0x18] sm:$0xff] %vm776_vm2, %v790_v16  ;;  %783 = vst.msk [vmem:[#allocation5 + $0x8] sm:$0xff] %vm776_vm2, %v780_v17 }
 0x209   : > { %v785_v18 = vpop.permute.xlu0 %784 }
 0x20a   : > { %788 = vst.msk [vmem:[#allocation5 + $0x10] sm:$0xff] %vm776_vm2, %v785_v18 }
 0x20b LB: >> { %v2158_v19 = vmov 0.0   ;;  %vm2159_vm3 = vmmov 0   ;;  %s2544_s26 = sshll.u32 %s2144_s15, 3  ;;  %s799_s15 = sadd.s32 1, %s2144_s15   ;;  %s2144_s15 = sphi %s2538_s15, %s799_s15  }
 0x20c   : >> { %1685 = vmatprep.subr.bf16.mxu0 %v2158_v19  ;;  %1687 = vmatprep.mubr.msk.bf16.mxu0 %vm2159_vm3, %v2158_v19  ;;  %s805_s30 = scalar_lea.vmem %s2512_s29, %s2544_s26  ;;  %s801_s0 = scalar_lea.vmem [#allocation5], %s2544_s26 }
 0x20d   : >> { %1691 = vmatprep.subr.bf16.mxu1 %v2158_v19  ;;  %1693 = vmatprep.mubr.msk.bf16.mxu1 %vm2159_vm3, %v2158_v19  ;;  %v1870_v20 = vld [vmem:[%s805_s30] sm:$0xff]   ;;  %s809_s4 = scalar_lea.vmem %s2489_s17, %s2544_s26 [#allocation7]  ;;  %s939_s16 = scalar_lea.vmem [#allocation6], %s2544_s26 }
 0x20e   : >> { %1686 = vmatpush3.bf16.msra.mxu0 %v1870_v20  ;;  %v1871_v38 = vld [vmem:[%s809_s4] sm:$0xff]   ;;  %p796_p6 = scmp.ge.s32.totalorder %s799_s15, 4  }
 0x20f   : >> { %v894_v39 = vsel %vm776_vm2, %v1871_v38, 0  ;;  %1100 = vst.msk [vmem:[#allocation3] sm:$0xff] (%p796_p6), %vm730_vm1, %v2153_v0  ;;  %1101 = vst.msk [vmem:[#allocation3 + $0x8] sm:$0xff] (%p796_p6), %vm730_vm1, %v2153_v0  ;;  %s2160_s27 = smov (%p796_p6), 16   ;;  %v1880_v55 = vld [vmem:[#allocation12] sm:$0xff] (%p796_p6)   ;;  %1721 = vmatprep.subr.bf16.mxu0 (%p796_p6), %v2153_v0  ;;  %s2161_s14 = smov (%p796_p6), 48  }
 0x210   : >> { %1692 = vmatpush3.bf16.xpose.msra.mxu1 %v894_v39  ;;  %v1881_v57 = vld [vmem:[#allocation12 + $0x8] sm:$0xff] (%p796_p6)   ;;  %s2162_s17 = smov (%p796_p6), 32   ;;  %v1882_v58 = vld [vmem:[#allocation12 + $0x10] sm:$0xff] (%p796_p6)   ;;  %v1883_v59 = vld [vmem:[#allocation12 + $0x18] sm:$0xff] (%p796_p6)   ;;  %vm949_vm4 = vcmask (%p796_p6), 261248   ;;  %vm957_vm5 = vcmask (%p796_p6), 392448  }
 0x211   : >> { %v802_v21 = vld [vmem:[%s801_s0] sm:$0xff]  ;;  %1697 = vmatprep.subr.bf16.mxu1 (%p796_p6), %v2153_v0  ;;  %vm965_vm6 = vcmask (%p796_p6), 523648   ;;  %s2759_s25 = sld [smem:[#allocation25_spill]] (%p796_p6)  ;;  %s2760_s12 = sld [smem:[#allocation26_spill]] (%p796_p6) }
 0x212   : >> { %1688 = vmatmul.mubr.msk.bf16.vlgmr.msra.gmra.mrb[0].mxu0 %vm776_vm2, %v802_v21  ;;  %s2761_s10 = sld [smem:[#allocation28_spill]] (%p796_p6)  ;;  %s2762_s26 = sld [smem:[#allocation29_spill]] (%p796_p6) }
 0x213   : > { %1737 = vmatprep.mubr.msk.bf16.mxu0 (%p796_p6), %vm2154_vm0, %v2153_v0  ;;  %s2765_s15 = sld [smem:[#allocation31_spill]] (%p796_p6)  ;;  %s1384_s30 = sshll.u32 (%p796_p6), %s2536_s13, 4  ;;  %s2655_s30 = int_to_ptr.vmem [resolvable:$true] %s1384_s30 }
 0x217   : > { %v1609_v1 = vld [vmem:[%s2759_s25] ss:$0 sm:$0xff] (%p796_p6)  ;;  %s2764_s25 = sld [smem:[#allocation30_spill]] (%p796_p6) }
 0x218   : > { %v1615_v39 = vld [vmem:[%s2761_s10] ss:$0 sm:$0xff] (%p796_p6) }
 0x2e5   : >> { %v855_v22 = vpop.f32.mrb[0].mxu0 }
 0x2e6   : >> { %v1689_v23 = vpop.f32.mrb[1].mxu0  ;;  %v862_v24 = vsel %vm776_vm2, %v855_v22, -inf }
 0x2e7   : >> { %863 = vmax.xlane.f32.xlu0 %v862_v24  ;;  %v858_v25 = vpop.f32.mrb[2].mxu0  ;;  %v1885_v23 = vld [vmem:[#allocation13 + $0x8] sm:$0xff] (%p796_p6)   ;;  %v1886_v24 = vld [vmem:[#allocation13 + $0x10] sm:$0xff] (%p796_p6)  }
 0x2e8   : >> { %v1690_v26 = vpop.f32.mrb[3].mxu0  ;;  %v865_v27 = vsel %vm776_vm2, %v858_v25, -inf }
 0x2e9   : > { %v1888_v26 = vld [vmem:[%s2760_s12] sm:$0xff] (%p796_p6)  }
 0x2ea   : > { %1722 = vmatpush3.bf16.msra.mxu0 (%p796_p6), %v1888_v26 }
 0x2eb   : >> { %866 = vmax.xlane.f32.xlu0 %v865_v27  ;;  %v1889_v27 = vld [vmem:[%s2760_s12 + $0x8] sm:$0xff] (%p796_p6)   ;;  %1723 = vmatprep.subr.bf16.mxu0 (%p796_p6), %v2153_v0 }
 0x2ee   : > { %1724 = vmatpush3.bf16.msra.mxu0 (%p796_p6), %v1889_v27 }
 0x2ef   : > { %1725 = vmatprep.subr.bf16.mxu0 (%p796_p6), %v2153_v0 }
 0x374   : >> { %v864_v28 = vpop.xlane.xlu0 %863 }
 0x375   : >> { %v868_v29 = vsub.f32 %v855_v22, %v864_v28  ;;  %v1890_v28 = vld [vmem:[%s2760_s12 + $0x10] sm:$0xff] (%p796_p6)  }
 0x376   : > { %1726 = vmatpush3.bf16.msra.mxu0 (%p796_p6), %v1890_v28 }
 0x377   : >> { %v870_v30 = vmul.f32 1.442695, %v868_v29  ;;  %v1891_v29 = vld [vmem:[%s2760_s12 + $0x18] sm:$0xff] (%p796_p6)   ;;  %1727 = vmatprep.subr.bf16.mxu0 (%p796_p6), %v2153_v0 }
 0x378   : >> { %v867_v31 = vpop.xlane.xlu0 %866 }
 0x379   : >> { %1872 = vpow2.f32 %v870_v30  ;;  %v869_v32 = vsub.f32 %v858_v25, %v867_v31  ;;  %v1887_v25 = vld [vmem:[#allocation13 + $0x18] sm:$0xff] (%p796_p6)   ;;  %v1893_v31 = vld [vmem:[%s2760_s12 + $0x28] sm:$0xff] (%p796_p6)  }
 0x37a   : > { %1728 = vmatpush3.bf16.msra.mxu0 (%p796_p6), %v1891_v29  ;;  %v1892_v30 = vld [vmem:[%s2760_s12 + $0x20] sm:$0xff] (%p796_p6)  }
 0x37b   : >> { %v872_v33 = vmul.f32 1.442695, %v869_v32  ;;  %1729 = vmatprep.subr.bf16.mxu0 (%p796_p6), %v2153_v0 }
 0x37d   : >> { %1874 = vpow2.f32 %v872_v33 }
 0x37e   : > { %1730 = vmatpush3.bf16.msra.mxu0 (%p796_p6), %v1892_v30 }
 0x37f   : > { %1731 = vmatprep.subr.bf16.mxu0 (%p796_p6), %v2153_v0 }
 0x382   : > { %1732 = vmatpush3.bf16.msra.mxu0 (%p796_p6), %v1893_v31 }
 0x383   : >> { %v1873_v34 = vpop.eup %1872  ;;  %1733 = vmatprep.subr.bf16.mxu0 (%p796_p6), %v2153_v0 }
 0x384   : >> { %v874_v35 = vsel %vm776_vm2, %v1873_v34, 0.0 }
 0x385   : >> { %875 = vadd.xlane.f32.xlu1 %v874_v35 }
 0x387   : >> { %v1875_v36 = vpop.eup %1874 }
 0x388   : >> { %v877_v37 = vsel %vm776_vm2, %v1875_v36, 0.0 }
 0x389   : >> { %878 = vadd.xlane.f32.xlu1 %v877_v37 }
 0x412   : >> { %v876_v40 = vpop.xlane.xlu1 %875 }
 0x413   : >> { %1876 = vrcp.f32 %v876_v40 }
 0x416   : >> { %v879_v41 = vpop.xlane.xlu1 %878 }
 0x417   : >> { %1878 = vrcp.f32 %v879_v41 }
 0x41d   : >> { %v1877_v42 = vpop.eup %1876 }
 0x41e   : >> { %v882_v44 = vmul.f32 %v1877_v42, %v1873_v34  ;;  %v1616_v42 = vld [vmem:[%s2762_s26] ss:$0 sm:$0xff] (%p796_p6)  ;;  %s1644_s26 = sshll.u32 (%p796_p6), %s2132_s21, 8  ;;  %s2046_s21 = scalar_lea.vmem (%p796_p6), %s2655_s30, 256 }
 0x41f   : > { %p2047_p10 = scmp.ne.s32.totalorder (%p796_p6), %s2655_s30, %s2046_s21 }
 0x421   : >> { %v1879_v43 = vpop.eup %1878  ;;  %p2048_p3 = pnand (%p796_p6), %p2047_p10, %p2427_p5 }
 0x422   : >> { %v883_v45 = vmul.f32 %v1879_v43, %v1875_v36 }
 0x423   : > { %p2049_p7 = pneg (%p796_p6), %p2048_p3 }
 0x424   : >> { %v884_v46 = vpack.c.bf16 %v883_v45, %v882_v44 }
 0x426   : >> { %1694 = vmatmul.mubr.msk.bf16.vlgmr.msra.gmra.mrb[0].mxu1 %vm776_vm2, %v884_v46 }
 0x427   : > { %1705 = vmatprep.mubr.msk.bf16.mxu1 (%p796_p6), %vm2154_vm0, %v2153_v0  ;;  %1698 = vmatpush3.bf16.msra.mxu1 (%p796_p6), %v1880_v55 }
 0x428   : > { %1699 = vmatprep.subr.bf16.mxu1 (%p796_p6), %v2153_v0 }
 0x42b   : > { %1700 = vmatpush3.bf16.msra.mxu1 (%p796_p6), %v1881_v57 }
 0x42c   : > { %1701 = vmatprep.subr.bf16.mxu1 (%p796_p6), %v2153_v0 }
 0x42f   : > { %1702 = vmatpush3.bf16.msra.mxu1 (%p796_p6), %v1882_v58 }
 0x430   : > { %1703 = vmatprep.subr.bf16.mxu1 (%p796_p6), %v2153_v0 }
 0x433   : > { %1704 = vmatpush3.bf16.msra.mxu1 (%p796_p6), %v1883_v59 }
 0x434   : > { %1709 = vmatprep.subr.bf16.mxu1 (%p796_p6), %v2153_v0 }
 0x4f8   : > { %798 = sbr.rel (!%p796_p6) target bundleno = 523 (0x20b), region = 177 }
 0x4f9   : >> { %v930_v47 = vpop.f32.mrb[0].mxu1 }
 0x4fa   : >> { %v1695_v48 = vpop.f32.mrb[1].mxu1 }
 0x4fb   : >> { %v933_v49 = vpop.f32.mrb[2].mxu1 }
 0x4fc   : >> { %v937_v50 = vpack.c.bf16 %v933_v49, %v930_v47  ;;  %v1696_v51 = vpop.f32.mrb[3].mxu1 }
 0x4fd   : > { %v1894_v51 = vld [vmem:[%s2760_s12 + $0x30] sm:$0xff] (%p796_p6)  }
 0x4fe   : >> { %940 = vst.msk [vmem:[%s939_s16] sm:$0xff] %vm776_vm2, %v937_v50  ;;  %1734 = vmatpush3.bf16.msra.mxu0 (%p796_p6), %v1894_v51  ;;  %s2766_s16 = sld [smem:[#allocation32_spill]] (%p796_p6) }
 0x4ff   : > { %1735 = vmatprep.subr.bf16.mxu0 %v2153_v0 }
 0x505   : > { %v944_v52 = vld [vmem:[#allocation6 + $0x8] sm:$0xff]  ;;  %v952_v53 = vld [vmem:[#allocation6 + $0x10] sm:$0xff]  ;;  %v960_v54 = vld [vmem:[#allocation6 + $0x18] sm:$0xff] }
 0x506   : > { %946 = vrot.lane.b32.xlu0 %v944_v52, %s2160_s27  ;;  %962 = vrot.lane.b32.xlu1 %v960_v54, %s2161_s14  ;;  %v941_v56 = vld [vmem:[#allocation6] sm:$0xff]  ;;  %v1895_v52 = vld [vmem:[%s2760_s12 + $0x38] sm:$0xff]   ;;  %s2653_s27 = scalar_lea.hbm %s2766_s16, %s1644_s26  ;;  %s1369_s14 = scalar_lea.sflag [#allocation9], %s2485_s9 }
 0x507   : > { %942 = vst.msk [vmem:[#allocation4] sm:$0xff] %vm776_vm2, %v941_v56  ;;  %1736 = vmatpush3.bf16.msra.mxu0 %v1895_v52 }
 0x50a   : > { %954 = vrot.lane.b32.xlu0 %v952_v53, %s2162_s17  ;;  %v1617_v53 = vld [vmem:[#allocation15] ss:$0 sm:$0xff]  ;;  %s2763_s17 = sld [smem:[#allocation27_spill]] }
 0x578   : > { %v947_v60 = vpop.permute.xlu0 %946  ;;  %v963_v61 = vpop.permute.xlu1 %962 }
 0x579   : > { %950 = vst.msk [vmem:[#allocation4] sm:$0xff] %vm949_vm4, %v947_v60 }
 0x57c   : > { %v955_v62 = vpop.permute.xlu0 %954 }
 0x57d   : > { %958 = vst.msk [vmem:[#allocation4] sm:$0xff] %vm957_vm5, %v955_v62 }
 0x57e   : > { %966 = vst.msk [vmem:[#allocation4] sm:$0xff] %vm965_vm6, %v963_v61 }
 0x585   : > { %v967_v63 = vld [vmem:[#allocation4] sm:$0xff] }
 0x586   : > { %1706 = vmatmul.mubr.msk.bf16.vlgmr.msra.gmra.mrb[0].mxu1 %vm730_vm1, %v967_v63  ;;  %v1191_v63 = vld [vmem:[#allocation3] sm:$0xff] }
 0x587   : > { %1717 = vmatprep.mubr.msk.bf16.mxu1 %vm2154_vm0, %v2153_v0 }
 0x659   : > { %v1044_v2 = vpop.f32.mrb[0].mxu1 }
 0x65a   : > { %v1045_v3 = vadd.f32 %v1609_v1, %v1044_v2  ;;  %v1707_v4 = vpop.f32.mrb[1].mxu1  ;;  %v1192_v2 = vld [vmem:[#allocation3 + $0x8] sm:$0xff] }
 0x65b   : > { %v1047_v7 = vpop.f32.mrb[2].mxu1 }
 0x65c   : > { %v1051_v8 = vadd.f32 %v1045_v3, %v2519_v5  ;;  %v1048_v9 = vadd.f32 %v1609_v1, %v1047_v7  ;;  %v1708_v10 = vpop.f32.mrb[3].mxu1 }
 0x65e   : > { %v1052_v11 = vadd.f32 %v1048_v9, %v2521_v6  ;;  %v1055_v12 = vsel %vm730_vm1, %v1051_v8, 0.0  ;;  %v1884_v6 = vld [vmem:[#allocation13] sm:$0xff]   ;;  %v1631_v9 = vld [vmem:[%s2763_s17] ss:$0 sm:$0xff]  ;;  %s2163_s17 = smov [#allocation16]  }
 0x65f   : > { %1056 = vadd.xlane.f32.xlu1 %v1055_v12  ;;  %1710 = vmatpush3.bf16.msra.mxu1 %v1884_v6  ;;  %s2050_s29 = sshll.u32 %s2163_s17, 4  ;;  %s2051_s29 = int_to_ptr.vmem [resolvable:$false] %s2050_s29 }
 0x660   : > { %v1058_v13 = vsel %vm730_vm1, %v1052_v11, 0.0  ;;  %1711 = vmatprep.subr.bf16.mxu1 %v2153_v0  ;;  %s2052_s6 = scalar_lea.vmem %s2051_s29, 512  ;;  %p2053_p9 = scmp.lt.s32.totalorder %s2655_s30, %s2051_s29 }
 0x661   : > { %1059 = vadd.xlane.f32.xlu0 %v1058_v13  ;;  %p2054_p0 = scmp.lt.s32.totalorder %s2052_s6, %s2046_s21 }
 0x663   : > { %1712 = vmatpush3.bf16.msra.mxu1 %v1885_v23  ;;  %p2055_p4 = por %p2054_p0, %p2053_p9 }
 0x664   : > { %1713 = vmatprep.subr.bf16.mxu1 %v2153_v0 }
 0x665   : > { %p2056_p13 = pnand %p2055_p4, %p2049_p7 }
 0x667   : > { %1714 = vmatpush3.bf16.msra.mxu1 %v1886_v24 }
 0x668   : > { %1715 = vmatprep.subr.bf16.mxu1 %v2153_v0 }
 0x66b   : > { %1716 = vmatpush3.bf16.msra.mxu1 %v1887_v25 }
 0x6ec   : > { %v1057_v14 = vpop.xlane.xlu1 %1056 }
 0x6ed   : > { %v1062_v15 = vmul.f32 0.015625, %v1057_v14 }
 0x6ee   : > { %v1060_v16 = vpop.xlane.xlu0 %1059 }
 0x6ef   : > { %v1064_v17 = vsub.f32 %v1051_v8, %v1062_v15  ;;  %v1063_v18 = vmul.f32 0.015625, %v1060_v16 }
 0x6f1   : > { %v1065_v19 = vsub.f32 %v1052_v11, %v1063_v18  ;;  %v1066_v20 = vmul.f32 %v1064_v17, %v1064_v17 }
 0x6f3   : > { %v1068_v21 = vsel %vm730_vm1, %v1066_v20, 0.0  ;;  %v1067_v5 = vmul.f32 %v1065_v19, %v1065_v19 }
 0x6f4   : > { %1069 = vadd.xlane.f32.xlu0 %v1068_v21 }
 0x6f5   : > { %v1071_v22 = vsel %vm730_vm1, %v1067_v5, 0.0 }
 0x6f6   : > { %1072 = vadd.xlane.f32.xlu1 %v1071_v22 }
 0x781   : > { %v1070_v32 = vpop.xlane.xlu0 %1069 }
 0x782   : > { %v1074_v33 = vmul.f32 0.015625, %v1070_v32 }
 0x783   : > { %v1073_v34 = vpop.xlane.xlu1 %1072 }
 0x784   : > { %v1076_v35 = vadd.f32 1e-05, %v1074_v33  ;;  %v1075_v36 = vmul.f32 0.015625, %v1073_v34  ;;  %v1632_v33 = vld [vmem:[%s2764_s25] ss:$0 sm:$0xff] }
 0x786   : > { %1896 = vrsqrt.f32 %v1076_v35  ;;  %v1077_v37 = vadd.f32 1e-05, %v1075_v36  ;;  %v1633_v36 = vld [vmem:[%s2765_s15] ss:$0 sm:$0xff] }
 0x788   : > { %1898 = vrsqrt.f32 %v1077_v37 }
 0x790   : > { %v1897_v38 = vpop.eup %1896 }
 0x791   : > { %v1080_v40 = vmul.f32 %v1897_v38, %v1064_v17 }
 0x792   : > { %v1899_v41 = vpop.eup %1898 }
 0x793   : > { %v1088_v43 = vmul.f32 %v1615_v39, %v1080_v40  ;;  %v1081_v44 = vmul.f32 %v1899_v41, %v1065_v19 }
 0x795   : > { %v1096_v45 = vadd.f32 %v1616_v42, %v1088_v43  ;;  %v1089_v46 = vmul.f32 %v1615_v39, %v1081_v44 }
 0x797   : > { %1098 = vst.msk [vmem:[#allocation2] sm:$0xff] %vm730_vm1, %v1096_v45  ;;  %v1097_v47 = vadd.f32 %v1616_v42, %v1089_v46 }
 0x799   : > { %1099 = vst.msk [vmem:[#allocation2 + $0x8] sm:$0xff] %vm730_vm1, %v1097_v47 }
 0x79e   : > { %v1102_v48 = vld [vmem:[#allocation2] sm:$0xff] }
 0x7a0   : > { %v1103_v49 = vld [vmem:[#allocation2 + $0x8] sm:$0xff] }
 0x7a1   : > { %v1104_v50 = vpack.c.bf16 %v1103_v49, %v1102_v48 }
 0x7a3   : > { %1718 = vmatmul.mubr.msk.bf16.vlgmr.msra.gmra.mrb[4].mxu1 %vm730_vm1, %v1104_v50 }
 0x876   : > { %v1182_v54 = vpop.f32.mrb[4].mxu1 }
 0x877   : > { %v1183_v55 = vadd.f32 %v1617_v53, %v1182_v54  ;;  %v1719_v56 = vpop.f32.mrb[5].mxu1 }
 0x878   : > { %v1185_v57 = vpop.f32.mrb[6].mxu1 }
 0x879   : > { %v1186_v58 = vadd.f32 %v1617_v53, %v1185_v57  ;;  %v1720_v59 = vpop.f32.mrb[7].mxu1  ;;  %v1189_v60 = vmax.f32 %v1183_v55, 0.0 }
 0x87b   : > { %v1190_v61 = vmax.f32 %v1186_v58, 0.0 }
 0x87d   : > { %v1193_v62 = vpack.c.bf16 %v1190_v61, %v1189_v60 }
 0x87f   : > { %1738 = vmatmul.mubr.bf16.vlgmr.msra.gmra.mrb[0].mxu0 %v1193_v62 }
 0x952   : > { %v1292_v1 = vpop.f32.mrb[0].mxu0 }
 0x953   : > { %v1299_v0 = vadd.f32 %v1292_v1, %v1191_v63  ;;  %v1739_v3 = vpop.f32.mrb[1].mxu0 }
 0x954   : > { %v1295_v4 = vpop.f32.mrb[2].mxu0 }
 0x955   : > { %1301 = vst.msk [vmem:[#allocation3] sm:$0xff] %vm730_vm1, %v1299_v0  ;;  %v1300_v7 = vadd.f32 %v1295_v4, %v1192_v2  ;;  %v1740_v8 = vpop.f32.mrb[3].mxu0 }
 0x957   : > { %1302 = vst.msk [vmem:[#allocation3 + $0x8] sm:$0xff] %vm730_vm1, %v1300_v7 }
 0x95c   : > { %v1306_v10 = vld [vmem:[#allocation3] sm:$0xff] }
 0x95d   : > { %v1315_v11 = vadd.f32 %v1631_v9, %v1306_v10 }
 0x95e   : > { %v1307_v12 = vld [vmem:[#allocation3 + $0x8] sm:$0xff] }
 0x95f   : > { %v1319_v13 = vadd.f32 %v1315_v11, %v1102_v48  ;;  %v1316_v14 = vadd.f32 %v1631_v9, %v1307_v12 }
 0x961   : > { %v1323_v15 = vsel %vm730_vm1, %v1319_v13, 0.0  ;;  %v1320_v16 = vadd.f32 %v1316_v14, %v1103_v49 }
 0x962   : > { %1324 = vadd.xlane.f32.xlu0 %v1323_v15 }
 0x963   : > { %v1326_v17 = vsel %vm730_vm1, %v1320_v16, 0.0 }
 0x964   : > { %1327 = vadd.xlane.f32.xlu1 %v1326_v17 }
 0x9ef   : > { %v1325_v18 = vpop.xlane.xlu0 %1324 }
 0x9f0   : > { %v1330_v19 = vmul.f32 0.015625, %v1325_v18 }
 0x9f1   : > { %v1328_v20 = vpop.xlane.xlu1 %1327 }
 0x9f2   : > { %v1332_v21 = vsub.f32 %v1319_v13, %v1330_v19  ;;  %v1331_v5 = vmul.f32 0.015625, %v1328_v20 }
 0x9f4   : > { %v1333_v22 = vsub.f32 %v1320_v16, %v1331_v5  ;;  %v1334_v6 = vmul.f32 %v1332_v21, %v1332_v21 }
 0x9f6   : > { %v1336_v23 = vsel %vm730_vm1, %v1334_v6, 0.0  ;;  %v1335_v24 = vmul.f32 %v1333_v22, %v1333_v22 }
 0x9f7   : > { %1337 = vadd.xlane.f32.xlu0 %v1336_v23 }
 0x9f8   : > { %v1339_v25 = vsel %vm730_vm1, %v1335_v24, 0.0 }
 0x9f9   : > { %1340 = vadd.xlane.f32.xlu1 %v1339_v25 }
 0xa84   : > { %v1338_v26 = vpop.xlane.xlu0 %1337 }
 0xa85   : > { %v1342_v27 = vmul.f32 0.015625, %v1338_v26 }
 0xa86   : > { %v1341_v28 = vpop.xlane.xlu1 %1340 }
 0xa87   : > { %v1344_v29 = vadd.f32 1e-05, %v1342_v27  ;;  %v1343_v30 = vmul.f32 0.015625, %v1341_v28 }
 0xa89   : > { %1900 = vrsqrt.f32 %v1344_v29  ;;  %v1345_v31 = vadd.f32 1e-05, %v1343_v30 }
 0xa8b   : > { %1902 = vrsqrt.f32 %v1345_v31 }
 0xa93   : > { %v1901_v32 = vpop.eup %1900 }
 0xa94   : > { %v1348_v34 = vmul.f32 %v1901_v32, %v1332_v21 }
 0xa95   : > { %v1903_v35 = vpop.eup %1902 }
 0xa96   : > { %v1356_v37 = vmul.f32 %v1632_v33, %v1348_v34  ;;  %v1349_v38 = vmul.f32 %v1903_v35, %v1333_v22 }
 0xa98   : > { %v1357_v39 = vmul.f32 %v1632_v33, %v1349_v38  ;;  %v1364_v40 = vadd.f32 %v1633_v36, %v1356_v37 }
 0xa9a   : > { %v1365_v41 = vadd.f32 %v1633_v36, %v1357_v39  ;;  %1366 = vst.msk [vmem:[%s2536_s13] sm:$0xff] %vm730_vm1, %v1364_v40 }
 0xa9c   : > { %1367 = vst.msk [vmem:[%s2536_s13 + $0x8] sm:$0xff] %vm730_vm1, %v1365_v41 }
 0xa9d   : > { %2059 = shalt.err (!%p2056_p13)
}
 0xa9e   : > { %s2060_s13 = scalar_lea.hbm %s2653_s27, 256  ;;  %s2064_s28 = scalar_lea.hbm %s2766_s16, 512 }
 0xa9f   : > { %p2061_p2 = scmp.ne.s32.totalorder %s2653_s27, %s2060_s13  ;;  %p2065_p11 = scmp.lt.u32.totalorder %s2653_s27, %s2766_s16 }
 0xaa0   : > { %p2066_p8 = scmp.lt.u32.totalorder %s2064_s28, %s2060_s13  ;;  %p2068_p10 = scmp.lt.u32.totalorder %s2060_s13, %s2653_s27 }
 0xaa1   : > { %p2062_p12 = pnand %p2061_p2, %p2427_p5 }
 0xaa2   : > { %p2067_p6 = por %p2066_p8, %p2065_p11 }
 0xaa3   : > { %p2063_p1 = pneg %p2062_p12 }
 0xaa4   : > { %p2069_p3 = por %p2068_p10, %p2067_p6 }
 0xaa6   : > { %p2070_p7 = pnand %p2069_p3, %p2063_p1 }
 0xaa8   : > { %2073 = shalt.err (!%p2070_p7)
}
 0xaa9   : > { %s2164_s0 = smov 128   ;;  %s2165_s4 = smov 8  }
 0xaaa   : > { %1759 = dma.vmem_to_hbm [thread:$0]  (%p2427_p5), %s2655_s30, 256, %s2653_s27, %s1369_s14, %s2164_s0, %s2164_s0, %s2165_s4  }
 0xaab PF: > { %s2767_s21 = sld [smem:[#allocation21_spill]]  ;;  %s2768_s17 = sld [smem:[#allocation22_spill]] }
 0xaac   : > { %p2770_p0 = scmp.ge.s32.totalorder %s2140_s23, 2 }
 0xab1   : > { %s1399_s29 = sand.u32 1, %s2767_s21   ;;  %p2769_p9 = scmp.ne.s32.totalorder %s2768_s17, 0 }
 0xab2   : > { %s1400_s6 = scalar_lea.sflag [#allocation9], %s1399_s29 }
 0xab3   : > { %p1779_p4 = pnand %p2770_p0, %p2769_p9 }
 0xab5   : > { %2115 = dma.done.wait (!%p1779_p4), %s1400_s6, 256  }
 0xab6   : > { %2117 = vsyncadd (!%p1779_p4), %s1400_s6, 4294967040  ;;  %s33_s23 = sadd.s32 1, %s2140_s23   ;;  %s2771_s13 = smov %s2436_s18 }
 0xab7   : > { %p30_p13 = scmp.ge.s32.totalorder %s33_s23, 4   ;;  %s2772_s18 = smov %s2124_s19 }
 0xab8   : > { %s2773_s19 = smov %s2128_s20  ;;  %s2774_s20 = smov %s2771_s13 }
 0xab9   : > { %s2775_s21 = smov %s2136_s22  ;;  %s2776_s22 = smov %s2778_s11 }
 0xaba   :  { %32 = sbr.rel (!%p30_p13) target bundleno = 19 (0x13), region = 188 }
 0xac1   :  { %1405 = vsyncpa [#allocation8], 1 }
 0xac2   :  { %1407 = vsyncpa [#allocation8 + $0x1], 1 }
 0xac3   :  { %1408 = vsyncpa [#allocation11], 1 }
 0xac4   :  { %1409 = vsyncpa [#allocation14], 1 }
 0xac5   :  { %1410 = vsyncpa [#allocation9], 1 }
 0xac6   :  { %1412 = vsyncpa [#allocation9 + $0x1], 1 }

</bundles_post_ra>
